<compile_context>
chip_gen: v6e
topology: v6e:2x2x1
jax: 0.10.0
libtpu: 0.0.40
codegen_flags: <defaults>
</compile_context>

<pallas_src>
import jax
import jax.numpy as jnp
from jax.experimental import pallas as pl
from jax.experimental.pallas import tpu as pltpu

LN_EPS = 1e-5  # PyTorch nn.LayerNorm default


def _round_up(x, m):
    return ((x + m - 1) // m) * m


# ---------------------------------------------------------------------------
# Fused kernel: layernorm -> src-mask -> graph conv per channel -> Wsyn/Wsem
# -> biaffine attention -> aspect-masked pooling -> affine_map + relu.
# One grid step processes BT batch examples.
# ---------------------------------------------------------------------------
def _make_fused_kernel(BT, L, D_real, Dp, Hp):
    inv_d = 1.0 / float(D_real)

    def kernel(seq_ref, mask_ref, asp_ref, adj_ref,
               gamma_ref, beta_ref,
               wg_syn_ref, bg_syn_ref, wg_sem_ref, bg_sem_ref,
               wsyn_ref, bsyn_ref, wsem_ref, bsem_ref,
               aff1_ref, aff2_ref, wmap_dep_ref, wmap_ag_ref, bmap_ref,
               out_ref):
        f32, bf16 = jnp.float32, jnp.bfloat16

        # ---- LayerNorm over the real feature dim (zero-padded lanes stay 0) ----
        x = seq_ref[...]                                        # (BT, L, Dp) f32
        mu = jnp.sum(x, axis=-1, keepdims=True) * inv_d
        ex2 = jnp.sum(x * x, axis=-1, keepdims=True) * inv_d
        var = ex2 - mu * mu                                     # exact under zero padding
        x_ln = (x - mu) * jax.lax.rsqrt(var + LN_EPS) * gamma_ref[...] + beta_ref[...]
        # bert_drop / pooled_drop: identity in eval mode.

        # ---- src-mask (CLS shift + zero row done in wrapper glue) ----
        gcn_in = (x_ln * mask_ref[...]).astype(bf16)            # (BT, L, Dp)

        # ---- normalized graph conv: the only per-example matmul on this side ----
        adj = adj_ref[...]                                      # (BT, L, L) bf16 (0/1 exact)
        denom = jnp.sum(adj.astype(f32), axis=-1, keepdims=True) + 1.0
        ax = jnp.einsum('bij,bjd->bid', adj, gcn_in,
                        preferred_element_type=f32)
        ax = ax * pl.reciprocal(denom, approx=True)
        ax2 = ax.reshape(BT * L, Dp).astype(bf16)               # token-batched M = BT*L

        # TODO(synk): SyntacticGCN / SemanticGCN bodies are not in the source; each
        # channel is stood in by one graph-conv layer relu(norm(A) x Wg + b).
        h_syn = jax.nn.relu(
            jnp.dot(ax2, wg_syn_ref[...], preferred_element_type=f32) + bg_syn_ref[...])
        h_sem = jax.nn.relu(
            jnp.dot(ax2, wg_sem_ref[...], preferred_element_type=f32) + bg_sem_ref[...])

        # ---- Wsyn / Wsem projections (weights pre-transposed to (Dp, Hp)) ----
        syn2 = jax.nn.relu(
            jnp.dot(h_syn.astype(bf16), wsyn_ref[...], preferred_element_type=f32)
            + bsyn_ref[...])
        sem2 = jax.nn.relu(
            jnp.dot(h_sem.astype(bf16), wsem_ref[...], preferred_element_type=f32)
            + bsem_ref[...])
        syn_bf = syn2.astype(bf16)                              # (BT*L, Hp)
        sem_bf = sem2.astype(bf16)
        syn = syn_bf.reshape(BT, L, Hp)
        sem = sem_bf.reshape(BT, L, Hp)

        # ---- biaffine attention: contract on shared last dim (no transposes) ----
        syn_a1 = jnp.dot(syn_bf, aff1_ref[...], preferred_element_type=f32).astype(bf16)
        sem_a2 = jnp.dot(sem_bf, aff2_ref[...], preferred_element_type=f32).astype(bf16)
        s1 = jnp.einsum('bih,bjh->bij', syn_a1.reshape(BT, L, Hp), sem,
                        preferred_element_type=f32)             # (BT, L, L)
        s2 = jnp.einsum('bih,bjh->bij', sem_a2.reshape(BT, L, Hp), syn,
                        preferred_element_type=f32)

        # softmax over L (matches reference: no padding mask inside maxlen)
        def _softmax(s):
            mmax = jnp.max(s, axis=-1, keepdims=True)
            e = jnp.exp(s - mmax)
            return e * pl.reciprocal(jnp.sum(e, axis=-1, keepdims=True), approx=True)

        A1 = _softmax(s1).astype(bf16)
        A2 = _softmax(s2).astype(bf16)
        g_dep = jnp.einsum('bij,bjh->bih', A1, sem, preferred_element_type=f32)
        g_ag = jnp.einsum('bij,bjh->bih', A2, syn, preferred_element_type=f32)
        # affine_dropout: identity in eval mode.

        # ---- aspect-masked mean pooling (VPU mul + sublane reduce, no M=1 matmul) ----
        am = asp_ref[...]                                       # (BT, L, 1) f32
        asp_wn = jnp.maximum(jnp.sum(am, axis=1), 1.0)          # (BT, 1); guard empty aspect
        inv_wn = pl.reciprocal(asp_wn, approx=True)
        dep_p = jnp.sum(g_dep * am, axis=1) * inv_wn            # (BT, Hp)
        ag_p = jnp.sum(g_ag * am, axis=1) * inv_wn

        # ---- relu(affine_map(cat([dep, ag], -1))), weights pre-split & transposed ----
        out = (jnp.dot(dep_p.astype(bf16), wmap_dep_ref[...], preferred_element_type=f32)
               + jnp.dot(ag_p.astype(bf16), wmap_ag_ref[...], preferred_element_type=f32)
               + bmap_ref[...])
        out_ref[0] = jax.nn.relu(out)

    return kernel


# ---------------------------------------------------------------------------
# Parameter prep: pre-transpose, zero-pad to lane-aligned shapes, bf16 weights.
# ---------------------------------------------------------------------------
def _prepare_params(p, Dp, Hp):
    f32, bf16 = jnp.float32, jnp.bfloat16

    def pad2(a, r, c):
        return jnp.pad(a, ((0, r - a.shape[0]), (0, c - a.shape[1])))

    return dict(
        gamma=pad2(p["ln_gamma"], 1, Dp).astype(f32),   # zero-padded -> padded lanes stay 0
        beta=pad2(p["ln_beta"], 1, Dp).astype(f32),
        wg_syn=pad2(p["wg_syn"], Dp, Dp).astype(bf16),
        bg_syn=pad2(p["bg_syn"], 1, Dp).astype(f32),
        wg_sem=pad2(p["wg_sem"], Dp, Dp).astype(bf16),
        bg_sem=pad2(p["bg_sem"], 1, Dp).astype(f32),
        wsyn_t=pad2(p["wsyn"].T, Dp, Hp).astype(bf16),  # (H, D) -> (D, H), pre-transposed
        bsyn=pad2(p["bsyn"], 1, Hp).astype(f32),
        wsem_t=pad2(p["wsem"].T, Dp, Hp).astype(bf16),
        bsem=pad2(p["bsem"], 1, Hp).astype(f32),
        affine1=pad2(p["affine1"], Hp, Hp).astype(bf16),
        affine2=pad2(p["affine2"], Hp, Hp).astype(bf16),
        wmap_dep_t=pad2(p["wmap_dep"].T, Hp, Hp).astype(bf16),
        wmap_ag_t=pad2(p["wmap_ag"].T, Hp, Hp).astype(bf16),
        bmap=pad2(p["bmap"], 1, Hp).astype(f32),
    )


# ---------------------------------------------------------------------------
# Full ContextEncoder forward (biaffine output_merge), single fused pallas_call.
# ---------------------------------------------------------------------------
def context_encoder_forward(sequence_output, src_mask, aspect_mask, dep_adj, params,
                            *, batch_tile=2):
    f32, bf16 = jnp.float32, jnp.bfloat16
    B, L, D = sequence_output.shape
    H = D // 2
    Dp = _round_up(D, 128)
    Hp = _round_up(H, 128)
    BT = max(1, min(batch_tile, B))
    Bp = _round_up(B, BT)
    nt = Bp // BT

    # Glue (pure data movement): drop the CLS row, append a zero row; effective
    # per-row mask = src_mask[:, :-1] followed by 0.
    seq_shift = jnp.concatenate(
        [sequence_output[:, 1:, :], jnp.zeros((B, 1, D), f32)], axis=1)
    mask_eff = jnp.concatenate(
        [src_mask.astype(f32)[:, :L - 1], jnp.zeros((B, 1), f32)], axis=1)[:, :, None]
    asp = aspect_mask.astype(f32)[:, :, None]

    def pad_bl(a, last):   # pad batch -> Bp and last dim -> `last` with zeros
        return jnp.pad(a, ((0, Bp - B), (0, 0), (0, last - a.shape[-1])))

    seq_p = pad_bl(seq_shift.astype(f32), Dp)
    mask_p = pad_bl(mask_eff, 1)
    asp_p = pad_bl(asp, 1)
    adj_p = jnp.pad(dep_adj, ((0, Bp - B), (0, 0), (0, 0))).astype(bf16)  # 0/1 exact in bf16

    pp = _prepare_params(params, Dp, Hp)
    kernel = _make_fused_kernel(BT, L, D, Dp, Hp)

    def tile3(d1, d2):
        return pl.BlockSpec((BT, d1, d2), lambda t: (t, 0, 0))

    def const(shape):
        return pl.BlockSpec(shape, lambda t: (0,) * len(shape))

    grid_spec = pltpu.PrefetchScalarGridSpec(
        num_scalar_prefetch=0,
        grid=(nt,),
        in_specs=[
            tile3(L, Dp),            # seq (CLS-shifted, padded)
            tile3(L, 1),             # effective src mask
            tile3(L, 1),             # aspect mask
            tile3(L, L),             # dependency adjacency
            const((1, Dp)), const((1, Dp)),                       # gamma, beta
            const((Dp, Dp)), const((1, Dp)),                      # wg_syn, bg_syn
            const((Dp, Dp)), const((1, Dp)),                      # wg_sem, bg_sem
            const((Dp, Hp)), const((1, Hp)),                      # wsyn_t, bsyn
            const((Dp, Hp)), const((1, Hp)),                      # wsem_t, bsem
            const((Hp, Hp)), const((Hp, Hp)),                     # affine1, affine2
            const((Hp, Hp)), const((Hp, Hp)),                     # wmap_dep_t, wmap_ag_t
            const((1, Hp)),                                       # bmap
        ],
        out_specs=pl.BlockSpec((1, BT, Hp), lambda t: (t, 0, 0)))

    out = pl.pallas_call(
        kernel,
        out_shape=jax.ShapeDtypeStruct((nt, BT, Hp), f32),
        grid_spec=grid_spec,
        compiler_params=pltpu.CompilerParams(dimension_semantics=("parallel",)),
    )(seq_p, mask_p, asp_p, adj_p,
      pp["gamma"], pp["beta"],
      pp["wg_syn"], pp["bg_syn"], pp["wg_sem"], pp["bg_sem"],
      pp["wsyn_t"], pp["bsyn"], pp["wsem_t"], pp["bsem"],
      pp["affine1"], pp["affine2"], pp["wmap_dep_t"], pp["wmap_ag_t"], pp["bmap"])

    # Un-pad: (nt, BT, Hp) -> (Bp, Hp) -> (B, H)
    return out.reshape(Bp, Hp)[:B, :H]


def init_params(key, D, H):
    ks = jax.random.split(key, 8)
    n = lambda k, shape, s=0.05: (jax.random.normal(k, shape, jnp.float32) * s)
    return dict(
        ln_gamma=jnp.ones((1, D), jnp.float32),      # LayerNorm default init
        ln_beta=jnp.zeros((1, D), jnp.float32),
        wg_syn=n(ks[0], (D, D)), bg_syn=jnp.zeros((1, D), jnp.float32),
        wg_sem=n(ks[1], (D, D)), bg_sem=jnp.zeros((1, D), jnp.float32),
        wsyn=n(ks[2], (H, D)),   bsyn=jnp.zeros((1, H), jnp.float32),
        wsem=n(ks[3], (H, D)),   bsem=jnp.zeros((1, H), jnp.float32),
        affine1=n(ks[4], (H, H)),
        affine2=n(ks[5], (H, H)),
        # affine_map: nn.Linear(2H, H) -> weight (H, 2H), split along the input dim.
        wmap_dep=n(ks[6], (H, H)),
        wmap_ag=n(ks[7], (H, H)),
        bmap=jnp.zeros((1, H), jnp.float32),
        # fc / inp_map (eye-init) are constructed in __init__ but unused in forward.
    )


if __name__ == "__main__":
    B, L, D = 4, 16, 96          # batch, max_length (= seq len), bert_dim
    H = D // 2                   # hidden_dim

    key = jax.random.PRNGKey(0)
    k_seq, k_adj, k_params = jax.random.split(key, 3)

    # TODO(synk): BERT backbone is external; use deterministic synthetic hidden states.
    sequence_output = jax.random.normal(k_seq, (B, L, D), jnp.float32)

    lengths = jnp.array([12, 10, 14, 8], jnp.int32)
    src_mask = (jnp.arange(L)[None, :] < lengths[:, None]).astype(jnp.float32)      # (B, L)
    aspect_mask = (jnp.zeros((B, L), jnp.float32)
                   .at[0, 3:6].set(1.0).at[1, 2:4].set(1.0)
                   .at[2, 5:7].set(1.0).at[3, 1:3].set(1.0))

    # TODO(synk): head_to_adj builds this from dependency heads on CPU; synthesize deterministically.
    rand_adj = (jax.random.uniform(k_adj, (B, L, L)) < 0.2).astype(jnp.float32)
    dep_adj = jnp.clip(rand_adj + jnp.swapaxes(rand_adj, 1, 2) + jnp.eye(L)[None], 0.0, 1.0)

    params = init_params(k_params, D, H)

    out = context_encoder_forward(sequence_output, src_mask, aspect_mask, dep_adj, params)
    out = jax.block_until_ready(out)
    assert out.shape == (B, H) and out.dtype == jnp.float32
    assert bool(jnp.all(jnp.isfinite(out)))
    print("KERNEL_OK")
</pallas_src>

<mosaic_0001>
module attributes {stable_mosaic.version = 11 : i64} {
  func.func @kernel(%arg0: i32, %arg1: memref<2x16x128xf32, #tpu.memory_space<vmem>>, %arg2: memref<2x16x1xf32, #tpu.memory_space<vmem>>, %arg3: memref<2x16x1xf32, #tpu.memory_space<vmem>>, %arg4: memref<2x16x16xbf16, #tpu.memory_space<vmem>>, %arg5: memref<1x128xf32, #tpu.memory_space<vmem>>, %arg6: memref<1x128xf32, #tpu.memory_space<vmem>>, %arg7: memref<128x128xbf16, #tpu.memory_space<vmem>>, %arg8: memref<1x128xf32, #tpu.memory_space<vmem>>, %arg9: memref<128x128xbf16, #tpu.memory_space<vmem>>, %arg10: memref<1x128xf32, #tpu.memory_space<vmem>>, %arg11: memref<128x128xbf16, #tpu.memory_space<vmem>>, %arg12: memref<1x128xf32, #tpu.memory_space<vmem>>, %arg13: memref<128x128xbf16, #tpu.memory_space<vmem>>, %arg14: memref<1x128xf32, #tpu.memory_space<vmem>>, %arg15: memref<128x128xbf16, #tpu.memory_space<vmem>>, %arg16: memref<128x128xbf16, #tpu.memory_space<vmem>>, %arg17: memref<128x128xbf16, #tpu.memory_space<vmem>>, %arg18: memref<128x128xbf16, #tpu.memory_space<vmem>>, %arg19: memref<1x128xf32, #tpu.memory_space<vmem>>, %arg20: memref<1x2x128xf32, #tpu.memory_space<vmem>>) attributes {dimension_semantics = [#tpu.dimension_semantics<parallel>], iteration_bounds = array<i64: 2>, scalar_prefetch = 0 : i64, scratch_operands = 0 : i64, tpu.core_type = #tpu.core_type<tc>, window_params = [{transform_indices = @transform_0, window_bounds = array<i64: 2, 16, 128>}, {transform_indices = @transform_1, window_bounds = array<i64: 2, 16, 1>}, {transform_indices = @transform_2, window_bounds = array<i64: 2, 16, 1>}, {transform_indices = @transform_3, window_bounds = array<i64: 2, 16, 16>}, {pipeline_mode = #tpu.pipeline_mode<synchronous>, transform_indices = @transform_4, window_bounds = array<i64: 1, 128>}, {pipeline_mode = #tpu.pipeline_mode<synchronous>, transform_indices = @transform_5, window_bounds = array<i64: 1, 128>}, {pipeline_mode = #tpu.pipeline_mode<synchronous>, transform_indices = @transform_6, window_bounds = array<i64: 128, 128>}, {pipeline_mode = #tpu.pipeline_mode<synchronous>, transform_indices = @transform_7, window_bounds = array<i64: 1, 128>}, {pipeline_mode = #tpu.pipeline_mode<synchronous>, transform_indices = @transform_8, window_bounds = array<i64: 128, 128>}, {pipeline_mode = #tpu.pipeline_mode<synchronous>, transform_indices = @transform_9, window_bounds = array<i64: 1, 128>}, {pipeline_mode = #tpu.pipeline_mode<synchronous>, transform_indices = @transform_10, window_bounds = array<i64: 128, 128>}, {pipeline_mode = #tpu.pipeline_mode<synchronous>, transform_indices = @transform_11, window_bounds = array<i64: 1, 128>}, {pipeline_mode = #tpu.pipeline_mode<synchronous>, transform_indices = @transform_12, window_bounds = array<i64: 128, 128>}, {pipeline_mode = #tpu.pipeline_mode<synchronous>, transform_indices = @transform_13, window_bounds = array<i64: 1, 128>}, {pipeline_mode = #tpu.pipeline_mode<synchronous>, transform_indices = @transform_14, window_bounds = array<i64: 128, 128>}, {pipeline_mode = #tpu.pipeline_mode<synchronous>, transform_indices = @transform_15, window_bounds = array<i64: 128, 128>}, {pipeline_mode = #tpu.pipeline_mode<synchronous>, transform_indices = @transform_16, window_bounds = array<i64: 128, 128>}, {pipeline_mode = #tpu.pipeline_mode<synchronous>, transform_indices = @transform_17, window_bounds = array<i64: 128, 128>}, {pipeline_mode = #tpu.pipeline_mode<synchronous>, transform_indices = @transform_18, window_bounds = array<i64: 1, 128>}, {transform_indices = @transform_19, window_bounds = array<i64: 1, 2, 128>}]} {
    %c0 = arith.constant 0 : index
    %c0_0 = arith.constant 0 : index
    %c0_1 = arith.constant 0 : index
    %0 = vector.load %arg1[%c0, %c0_0, %c0_1] : memref<2x16x128xf32, #tpu.memory_space<vmem>>, vector<2x16x128xf32>
    %cst = arith.constant dense<0.000000e+00> : vector<2x16xf32>
    %1 = vector.multi_reduction <add>, %0, %cst [2] : vector<2x16x128xf32> to vector<2x16xf32>
    %2 = vector.shape_cast %1 : vector<2x16xf32> to vector<2x16x1xf32>
    %cst_2 = arith.constant 0.010416667 : f32
    %3 = vector.broadcast %cst_2 : f32 to vector<2x16x1xf32>
    %4 = arith.mulf %2, %3 : vector<2x16x1xf32>
    %5 = arith.mulf %0, %0 : vector<2x16x128xf32>
    %cst_3 = arith.constant dense<0.000000e+00> : vector<2x16xf32>
    %6 = vector.multi_reduction <add>, %5, %cst_3 [2] : vector<2x16x128xf32> to vector<2x16xf32>
    %7 = vector.shape_cast %6 : vector<2x16xf32> to vector<2x16x1xf32>
    %cst_4 = arith.constant 0.010416667 : f32
    %8 = vector.broadcast %cst_4 : f32 to vector<2x16x1xf32>
    %9 = arith.mulf %7, %8 : vector<2x16x1xf32>
    %10 = arith.mulf %4, %4 : vector<2x16x1xf32>
    %11 = arith.subf %9, %10 : vector<2x16x1xf32>
    %12 = vector.broadcast %4 : vector<2x16x1xf32> to vector<2x16x128xf32>
    %13 = arith.subf %0, %12 : vector<2x16x128xf32>
    %cst_5 = arith.constant 9.99999974E-6 : f32
    %14 = vector.broadcast %cst_5 : f32 to vector<2x16x1xf32>
    %15 = arith.addf %11, %14 : vector<2x16x1xf32>
    %16 = math.rsqrt %15 : vector<2x16x1xf32>
    %17 = vector.broadcast %16 : vector<2x16x1xf32> to vector<2x16x128xf32>
    %18 = arith.mulf %13, %17 : vector<2x16x128xf32>
    %c0_6 = arith.constant 0 : index
    %c0_7 = arith.constant 0 : index
    %19 = vector.load %arg5[%c0_6, %c0_7] : memref<1x128xf32, #tpu.memory_space<vmem>>, vector<1x128xf32>
    %20 = vector.shape_cast %19 : vector<1x128xf32> to vector<1x1x128xf32>
    %21 = vector.broadcast %20 : vector<1x1x128xf32> to vector<2x16x128xf32>
    %22 = arith.mulf %18, %21 : vector<2x16x128xf32>
    %c0_8 = arith.constant 0 : index
    %c0_9 = arith.constant 0 : index
    %23 = vector.load %arg6[%c0_8, %c0_9] : memref<1x128xf32, #tpu.memory_space<vmem>>, vector<1x128xf32>
    %24 = vector.shape_cast %23 : vector<1x128xf32> to vector<1x1x128xf32>
    %25 = vector.broadcast %24 : vector<1x1x128xf32> to vector<2x16x128xf32>
    %26 = arith.addf %22, %25 : vector<2x16x128xf32>
    %c0_10 = arith.constant 0 : index
    %c0_11 = arith.constant 0 : index
    %c0_12 = arith.constant 0 : index
    %27 = vector.load %arg2[%c0_10, %c0_11, %c0_12] : memref<2x16x1xf32, #tpu.memory_space<vmem>>, vector<2x16x1xf32>
    %28 = vector.broadcast %27 : vector<2x16x1xf32> to vector<2x16x128xf32>
    %29 = arith.mulf %26, %28 : vector<2x16x128xf32>
    %30 = arith.truncf %29 : vector<2x16x128xf32> to vector<2x16x128xbf16>
    %c0_13 = arith.constant 0 : index
    %c0_14 = arith.constant 0 : index
    %c0_15 = arith.constant 0 : index
    %31 = vector.load %arg4[%c0_13, %c0_14, %c0_15] : memref<2x16x16xbf16, #tpu.memory_space<vmem>>, vector<2x16x16xbf16>
    %32 = arith.extf %31 : vector<2x16x16xbf16> to vector<2x16x16xf32>
    %cst_16 = arith.constant dense<0.000000e+00> : vector<2x16xf32>
    %33 = vector.multi_reduction <add>, %32, %cst_16 [2] : vector<2x16x16xf32> to vector<2x16xf32>
    %34 = vector.shape_cast %33 : vector<2x16xf32> to vector<2x16x1xf32>
    %cst_17 = arith.constant 1.000000e+00 : f32
    %35 = vector.broadcast %cst_17 : f32 to vector<2x16x1xf32>
    %36 = arith.addf %34, %35 : vector<2x16x1xf32>
    "tpu.trace_start"() <{level = 10 : i32, message = "bij,bjd->bid"}> : () -> ()
    %cst_18 = arith.constant dense<0.000000e+00> : vector<2x16x128xf32>
    %37 = tpu.matmul %31, %30, %cst_18 {dimension_numbers = #tpu.dot_dimension_numbers<[2], [1], [1], [2], [0, 0, 0, 1, 1, 2], [0], [0]>} : vector<2x16x16xbf16>, vector<2x16x128xbf16>, vector<2x16x128xf32> -> vector<2x16x128xf32>
    "tpu.trace_stop"() : () -> ()
    %38 = tpu.reciprocal %36 {approx = true} : vector<2x16x1xf32> -> vector<2x16x1xf32>
    %39 = vector.broadcast %38 : vector<2x16x1xf32> to vector<2x16x128xf32>
    %40 = arith.mulf %37, %39 : vector<2x16x128xf32>
    %41 = vector.shape_cast %40 : vector<2x16x128xf32> to vector<32x128xf32>
    %42 = arith.truncf %41 : vector<32x128xf32> to vector<32x128xbf16>
    %c0_19 = arith.constant 0 : index
    %c0_20 = arith.constant 0 : index
    %43 = vector.load %arg7[%c0_19, %c0_20] : memref<128x128xbf16, #tpu.memory_space<vmem>>, vector<128x128xbf16>
    %cst_21 = arith.constant dense<0.000000e+00> : vector<32x128xf32>
    %44 = tpu.matmul %42, %43, %cst_21 {dimension_numbers = #tpu.dot_dimension_numbers<[1], [0], [0], [1], [0, 0, 1, 1], [], []>} : vector<32x128xbf16>, vector<128x128xbf16>, vector<32x128xf32> -> vector<32x128xf32>
    %c0_22 = arith.constant 0 : index
    %c0_23 = arith.constant 0 : index
    %45 = vector.load %arg8[%c0_22, %c0_23] : memref<1x128xf32, #tpu.memory_space<vmem>>, vector<1x128xf32>
    %46 = vector.broadcast %45 : vector<1x128xf32> to vector<32x128xf32>
    %47 = arith.addf %44, %46 : vector<32x128xf32>
    %cst_24 = arith.constant 0.000000e+00 : f32
    %48 = vector.broadcast %cst_24 : f32 to vector<32x128xf32>
    %49 = arith.maximumf %47, %48 : vector<32x128xf32>
    %c0_25 = arith.constant 0 : index
    %c0_26 = arith.constant 0 : index
    %50 = vector.load %arg9[%c0_25, %c0_26] : memref<128x128xbf16, #tpu.memory_space<vmem>>, vector<128x128xbf16>
    %cst_27 = arith.constant dense<0.000000e+00> : vector<32x128xf32>
    %51 = tpu.matmul %42, %50, %cst_27 {dimension_numbers = #tpu.dot_dimension_numbers<[1], [0], [0], [1], [0, 0, 1, 1], [], []>} : vector<32x128xbf16>, vector<128x128xbf16>, vector<32x128xf32> -> vector<32x128xf32>
    %c0_28 = arith.constant 0 : index
    %c0_29 = arith.constant 0 : index
    %52 = vector.load %arg10[%c0_28, %c0_29] : memref<1x128xf32, #tpu.memory_space<vmem>>, vector<1x128xf32>
    %53 = vector.broadcast %52 : vector<1x128xf32> to vector<32x128xf32>
    %54 = arith.addf %51, %53 : vector<32x128xf32>
    %cst_30 = arith.constant 0.000000e+00 : f32
    %55 = vector.broadcast %cst_30 : f32 to vector<32x128xf32>
    %56 = arith.maximumf %54, %55 : vector<32x128xf32>
    %57 = arith.truncf %49 : vector<32x128xf32> to vector<32x128xbf16>
    %c0_31 = arith.constant 0 : index
    %c0_32 = arith.constant 0 : index
    %58 = vector.load %arg11[%c0_31, %c0_32] : memref<128x128xbf16, #tpu.memory_space<vmem>>, vector<128x128xbf16>
    %cst_33 = arith.constant dense<0.000000e+00> : vector<32x128xf32>
    %59 = tpu.matmul %57, %58, %cst_33 {dimension_numbers = #tpu.dot_dimension_numbers<[1], [0], [0], [1], [0, 0, 1, 1], [], []>} : vector<32x128xbf16>, vector<128x128xbf16>, vector<32x128xf32> -> vector<32x128xf32>
    %c0_34 = arith.constant 0 : index
    %c0_35 = arith.constant 0 : index
    %60 = vector.load %arg12[%c0_34, %c0_35] : memref<1x128xf32, #tpu.memory_space<vmem>>, vector<1x128xf32>
    %61 = vector.broadcast %60 : vector<1x128xf32> to vector<32x128xf32>
    %62 = arith.addf %59, %61 : vector<32x128xf32>
    %cst_36 = arith.constant 0.000000e+00 : f32
    %63 = vector.broadcast %cst_36 : f32 to vector<32x128xf32>
    %64 = arith.maximumf %62, %63 : vector<32x128xf32>
    %65 = arith.truncf %56 : vector<32x128xf32> to vector<32x128xbf16>
    %c0_37 = arith.constant 0 : index
    %c0_38 = arith.constant 0 : index
    %66 = vector.load %arg13[%c0_37, %c0_38] : memref<128x128xbf16, #tpu.memory_space<vmem>>, vector<128x128xbf16>
    %cst_39 = arith.constant dense<0.000000e+00> : vector<32x128xf32>
    %67 = tpu.matmul %65, %66, %cst_39 {dimension_numbers = #tpu.dot_dimension_numbers<[1], [0], [0], [1], [0, 0, 1, 1], [], []>} : vector<32x128xbf16>, vector<128x128xbf16>, vector<32x128xf32> -> vector<32x128xf32>
    %c0_40 = arith.constant 0 : index
    %c0_41 = arith.constant 0 : index
    %68 = vector.load %arg14[%c0_40, %c0_41] : memref<1x128xf32, #tpu.memory_space<vmem>>, vector<1x128xf32>
    %69 = vector.broadcast %68 : vector<1x128xf32> to vector<32x128xf32>
    %70 = arith.addf %67, %69 : vector<32x128xf32>
    %cst_42 = arith.constant 0.000000e+00 : f32
    %71 = vector.broadcast %cst_42 : f32 to vector<32x128xf32>
    %72 = arith.maximumf %70, %71 : vector<32x128xf32>
    %73 = arith.truncf %64 : vector<32x128xf32> to vector<32x128xbf16>
    %74 = arith.truncf %72 : vector<32x128xf32> to vector<32x128xbf16>
    %75 = vector.shape_cast %73 : vector<32x128xbf16> to vector<2x16x128xbf16>
    %76 = vector.shape_cast %74 : vector<32x128xbf16> to vector<2x16x128xbf16>
    %c0_43 = arith.constant 0 : index
    %c0_44 = arith.constant 0 : index
    %77 = vector.load %arg15[%c0_43, %c0_44] : memref<128x128xbf16, #tpu.memory_space<vmem>>, vector<128x128xbf16>
    %cst_45 = arith.constant dense<0.000000e+00> : vector<32x128xf32>
    %78 = tpu.matmul %73, %77, %cst_45 {dimension_numbers = #tpu.dot_dimension_numbers<[1], [0], [0], [1], [0, 0, 1, 1], [], []>} : vector<32x128xbf16>, vector<128x128xbf16>, vector<32x128xf32> -> vector<32x128xf32>
    %79 = arith.truncf %78 : vector<32x128xf32> to vector<32x128xbf16>
    %c0_46 = arith.constant 0 : index
    %c0_47 = arith.constant 0 : index
    %80 = vector.load %arg16[%c0_46, %c0_47] : memref<128x128xbf16, #tpu.memory_space<vmem>>, vector<128x128xbf16>
    %cst_48 = arith.constant dense<0.000000e+00> : vector<32x128xf32>
    %81 = tpu.matmul %74, %80, %cst_48 {dimension_numbers = #tpu.dot_dimension_numbers<[1], [0], [0], [1], [0, 0, 1, 1], [], []>} : vector<32x128xbf16>, vector<128x128xbf16>, vector<32x128xf32> -> vector<32x128xf32>
    %82 = arith.truncf %81 : vector<32x128xf32> to vector<32x128xbf16>
    %83 = vector.shape_cast %79 : vector<32x128xbf16> to vector<2x16x128xbf16>
    "tpu.trace_start"() <{level = 10 : i32, message = "bih,bjh->bij"}> : () -> ()
    %cst_49 = arith.constant dense<0.000000e+00> : vector<2x16x16xf32>
    %84 = tpu.matmul %83, %76, %cst_49 {dimension_numbers = #tpu.dot_dimension_numbers<[2], [2], [1], [1], [0, 0, 0, 1, 1, 1], [0], [0]>} : vector<2x16x128xbf16>, vector<2x16x128xbf16>, vector<2x16x16xf32> -> vector<2x16x16xf32>
    "tpu.trace_stop"() : () -> ()
    %85 = vector.shape_cast %82 : vector<32x128xbf16> to vector<2x16x128xbf16>
    "tpu.trace_start"() <{level = 10 : i32, message = "bih,bjh->bij"}> : () -> ()
    %cst_50 = arith.constant dense<0.000000e+00> : vector<2x16x16xf32>
    %86 = tpu.matmul %85, %75, %cst_50 {dimension_numbers = #tpu.dot_dimension_numbers<[2], [2], [1], [1], [0, 0, 0, 1, 1, 1], [0], [0]>} : vector<2x16x128xbf16>, vector<2x16x128xbf16>, vector<2x16x16xf32> -> vector<2x16x16xf32>
    "tpu.trace_stop"() : () -> ()
    %cst_51 = arith.constant dense<0xFF800000> : vector<2x16xf32>
    %87 = vector.multi_reduction <maximumf>, %84, %cst_51 [2] : vector<2x16x16xf32> to vector<2x16xf32>
    %88 = vector.shape_cast %87 : vector<2x16xf32> to vector<2x16x1xf32>
    %89 = vector.broadcast %88 : vector<2x16x1xf32> to vector<2x16x16xf32>
    %90 = arith.subf %84, %89 : vector<2x16x16xf32>
    %91 = math.exp %90 : vector<2x16x16xf32>
    %cst_52 = arith.constant dense<0.000000e+00> : vector<2x16xf32>
    %92 = vector.multi_reduction <add>, %91, %cst_52 [2] : vector<2x16x16xf32> to vector<2x16xf32>
    %93 = vector.shape_cast %92 : vector<2x16xf32> to vector<2x16x1xf32>
    %94 = tpu.reciprocal %93 {approx = true} : vector<2x16x1xf32> -> vector<2x16x1xf32>
    %95 = vector.broadcast %94 : vector<2x16x1xf32> to vector<2x16x16xf32>
    %96 = arith.mulf %91, %95 : vector<2x16x16xf32>
    %97 = arith.truncf %96 : vector<2x16x16xf32> to vector<2x16x16xbf16>
    %cst_53 = arith.constant dense<0xFF800000> : vector<2x16xf32>
    %98 = vector.multi_reduction <maximumf>, %86, %cst_53 [2] : vector<2x16x16xf32> to vector<2x16xf32>
    %99 = vector.shape_cast %98 : vector<2x16xf32> to vector<2x16x1xf32>
    %100 = vector.broadcast %99 : vector<2x16x1xf32> to vector<2x16x16xf32>
    %101 = arith.subf %86, %100 : vector<2x16x16xf32>
    %102 = math.exp %101 : vector<2x16x16xf32>
    %cst_54 = arith.constant dense<0.000000e+00> : vector<2x16xf32>
    %103 = vector.multi_reduction <add>, %102, %cst_54 [2] : vector<2x16x16xf32> to vector<2x16xf32>
    %104 = vector.shape_cast %103 : vector<2x16xf32> to vector<2x16x1xf32>
    %105 = tpu.reciprocal %104 {approx = true} : vector<2x16x1xf32> -> vector<2x16x1xf32>
    %106 = vector.broadcast %105 : vector<2x16x1xf32> to vector<2x16x16xf32>
    %107 = arith.mulf %102, %106 : vector<2x16x16xf32>
    %108 = arith.truncf %107 : vector<2x16x16xf32> to vector<2x16x16xbf16>
    "tpu.trace_start"() <{level = 10 : i32, message = "bij,bjh->bih"}> : () -> ()
    %cst_55 = arith.constant dense<0.000000e+00> : vector<2x16x128xf32>
    %109 = tpu.matmul %97, %76, %cst_55 {dimension_numbers = #tpu.dot_dimension_numbers<[2], [1], [1], [2], [0, 0, 0, 1, 1, 2], [0], [0]>} : vector<2x16x16xbf16>, vector<2x16x128xbf16>, vector<2x16x128xf32> -> vector<2x16x128xf32>
    %cst_56 = arith.constant dense<0.000000e+00> : vector<2x16x128xf32>
    %110 = tpu.matmul %108, %75, %cst_56 {dimension_numbers = #tpu.dot_dimension_numbers<[2], [1], [1], [2], [0, 0, 0, 1, 1, 2], [0], [0]>} : vector<2x16x16xbf16>, vector<2x16x128xbf16>, vector<2x16x128xf32> -> vector<2x16x128xf32>
    "tpu.trace_stop"() : () -> ()
    %c0_57 = arith.constant 0 : index
    %c0_58 = arith.constant 0 : index
    %c0_59 = arith.constant 0 : index
    %111 = vector.load %arg3[%c0_57, %c0_58, %c0_59] : memref<2x16x1xf32, #tpu.memory_space<vmem>>, vector<2x16x1xf32>
    %cst_60 = arith.constant dense<0.000000e+00> : vector<2x1xf32>
    %112 = vector.multi_reduction <add>, %111, %cst_60 [1] : vector<2x16x1xf32> to vector<2x1xf32>
    %cst_61 = arith.constant 1.000000e+00 : f32
    %113 = vector.broadcast %cst_61 : f32 to vector<2x1xf32>
    %114 = arith.maximumf %112, %113 : vector<2x1xf32>
    %115 = tpu.reciprocal %114 {approx = true} : vector<2x1xf32> -> vector<2x1xf32>
    %116 = vector.broadcast %111 : vector<2x16x1xf32> to vector<2x16x128xf32>
    %117 = arith.mulf %109, %116 : vector<2x16x128xf32>
    %cst_62 = arith.constant dense<0.000000e+00> : vector<2x128xf32>
    %118 = vector.multi_reduction <add>, %117, %cst_62 [1] : vector<2x16x128xf32> to vector<2x128xf32>
    %119 = vector.broadcast %115 : vector<2x1xf32> to vector<2x128xf32>
    %120 = arith.mulf %118, %119 : vector<2x128xf32>
    %121 = vector.broadcast %111 : vector<2x16x1xf32> to vector<2x16x128xf32>
    %122 = arith.mulf %110, %121 : vector<2x16x128xf32>
    %cst_63 = arith.constant dense<0.000000e+00> : vector<2x128xf32>
    %123 = vector.multi_reduction <add>, %122, %cst_63 [1] : vector<2x16x128xf32> to vector<2x128xf32>
    %124 = vector.broadcast %115 : vector<2x1xf32> to vector<2x128xf32>
    %125 = arith.mulf %123, %124 : vector<2x128xf32>
    %126 = arith.truncf %120 : vector<2x128xf32> to vector<2x128xbf16>
    %c0_64 = arith.constant 0 : index
    %c0_65 = arith.constant 0 : index
    %127 = vector.load %arg17[%c0_64, %c0_65] : memref<128x128xbf16, #tpu.memory_space<vmem>>, vector<128x128xbf16>
    %cst_66 = arith.constant dense<0.000000e+00> : vector<2x128xf32>
    %128 = tpu.matmul %126, %127, %cst_66 {dimension_numbers = #tpu.dot_dimension_numbers<[1], [0], [0], [1], [0, 0, 1, 1], [], []>} : vector<2x128xbf16>, vector<128x128xbf16>, vector<2x128xf32> -> vector<2x128xf32>
    %129 = arith.truncf %125 : vector<2x128xf32> to vector<2x128xbf16>
    %c0_67 = arith.constant 0 : index
    %c0_68 = arith.constant 0 : index
    %130 = vector.load %arg18[%c0_67, %c0_68] : memref<128x128xbf16, #tpu.memory_space<vmem>>, vector<128x128xbf16>
    %cst_69 = arith.constant dense<0.000000e+00> : vector<2x128xf32>
    %131 = tpu.matmul %129, %130, %cst_69 {dimension_numbers = #tpu.dot_dimension_numbers<[1], [0], [0], [1], [0, 0, 1, 1], [], []>} : vector<2x128xbf16>, vector<128x128xbf16>, vector<2x128xf32> -> vector<2x128xf32>
    %132 = arith.addf %128, %131 : vector<2x128xf32>
    %c0_70 = arith.constant 0 : index
    %c0_71 = arith.constant 0 : index
    %133 = vector.load %arg19[%c0_70, %c0_71] : memref<1x128xf32, #tpu.memory_space<vmem>>, vector<1x128xf32>
    %134 = vector.broadcast %133 : vector<1x128xf32> to vector<2x128xf32>
    %135 = arith.addf %132, %134 : vector<2x128xf32>
    %cst_72 = arith.constant 0.000000e+00 : f32
    %136 = vector.broadcast %cst_72 : f32 to vector<2x128xf32>
    %137 = arith.maximumf %135, %136 : vector<2x128xf32>
    %c0_73 = arith.constant 0 : index
    %c0_74 = arith.constant 0 : index
    %c0_75 = arith.constant 0 : index
    %138 = vector.load %arg20[%c0_73, %c0_74, %c0_75] : memref<1x2x128xf32, #tpu.memory_space<vmem>>, vector<1x2x128xf32>
    %139 = vector.shape_cast %138 : vector<1x2x128xf32> to vector<2x128xf32>
    %140 = vector.shape_cast %137 : vector<2x128xf32> to vector<1x2x128xf32>
    tpu.vector_store %arg20[%c0_73, %c0_74, %c0_75], %140 {strides = array<i32>} : memref<1x2x128xf32, #tpu.memory_space<vmem>>, vector<1x2x128xf32>,
    return
  }
  func.func @transform_0(%arg0: i32) -> (i32, i32, i32) {
    %c0_i32 = arith.constant 0 : i32
    %c0_i32_0 = arith.constant 0 : i32
    %c0_i32_1 = arith.constant 0 : i32
    return %arg0, %c0_i32, %c0_i32_0 : i32, i32, i32
  }
  func.func @transform_1(%arg0: i32) -> (i32, i32, i32) {
    %c0_i32 = arith.constant 0 : i32
    %c0_i32_0 = arith.constant 0 : i32
    %c0_i32_1 = arith.constant 0 : i32
    return %arg0, %c0_i32, %c0_i32_0 : i32, i32, i32
  }
  func.func @transform_2(%arg0: i32) -> (i32, i32, i32) {
    %c0_i32 = arith.constant 0 : i32
    %c0_i32_0 = arith.constant 0 : i32
    %c0_i32_1 = arith.constant 0 : i32
    return %arg0, %c0_i32, %c0_i32_0 : i32, i32, i32
  }
  func.func @transform_3(%arg0: i32) -> (i32, i32, i32) {
    %c0_i32 = arith.constant 0 : i32
    %c0_i32_0 = arith.constant 0 : i32
    %c0_i32_1 = arith.constant 0 : i32
    return %arg0, %c0_i32, %c0_i32_0 : i32, i32, i32
  }
  func.func @transform_4(%arg0: i32) -> (i32, i32) {
    %c0_i32 = arith.constant 0 : i32
    %c0_i32_0 = arith.constant 0 : i32
    %c0_i32_1 = arith.constant 0 : i32
    return %c0_i32, %c0_i32_0 : i32, i32
  }
  func.func @transform_5(%arg0: i32) -> (i32, i32) {
    %c0_i32 = arith.constant 0 : i32
    %c0_i32_0 = arith.constant 0 : i32
    %c0_i32_1 = arith.constant 0 : i32
    return %c0_i32, %c0_i32_0 : i32, i32
  }
  func.func @transform_6(%arg0: i32) -> (i32, i32) {
    %c0_i32 = arith.constant 0 : i32
    %c0_i32_0 = arith.constant 0 : i32
    %c0_i32_1 = arith.constant 0 : i32
    return %c0_i32, %c0_i32_0 : i32, i32
  }
  func.func @transform_7(%arg0: i32) -> (i32, i32) {
    %c0_i32 = arith.constant 0 : i32
    %c0_i32_0 = arith.constant 0 : i32
    %c0_i32_1 = arith.constant 0 : i32
    return %c0_i32, %c0_i32_0 : i32, i32
  }
  func.func @transform_8(%arg0: i32) -> (i32, i32) {
    %c0_i32 = arith.constant 0 : i32
    %c0_i32_0 = arith.constant 0 : i32
    %c0_i32_1 = arith.constant 0 : i32
    return %c0_i32, %c0_i32_0 : i32, i32
  }
  func.func @transform_9(%arg0: i32) -> (i32, i32) {
    %c0_i32 = arith.constant 0 : i32
    %c0_i32_0 = arith.constant 0 : i32
    %c0_i32_1 = arith.constant 0 : i32
    return %c0_i32, %c0_i32_0 : i32, i32
  }
  func.func @transform_10(%arg0: i32) -> (i32, i32) {
    %c0_i32 = arith.constant 0 : i32
    %c0_i32_0 = arith.constant 0 : i32
    %c0_i32_1 = arith.constant 0 : i32
    return %c0_i32, %c0_i32_0 : i32, i32
  }
  func.func @transform_11(%arg0: i32) -> (i32, i32) {
    %c0_i32 = arith.constant 0 : i32
    %c0_i32_0 = arith.constant 0 : i32
    %c0_i32_1 = arith.constant 0 : i32
    return %c0_i32, %c0_i32_0 : i32, i32
  }
  func.func @transform_12(%arg0: i32) -> (i32, i32) {
    %c0_i32 = arith.constant 0 : i32
    %c0_i32_0 = arith.constant 0 : i32
    %c0_i32_1 = arith.constant 0 : i32
    return %c0_i32, %c0_i32_0 : i32, i32
  }
  func.func @transform_13(%arg0: i32) -> (i32, i32) {
    %c0_i32 = arith.constant 0 : i32
    %c0_i32_0 = arith.constant 0 : i32
    %c0_i32_1 = arith.constant 0 : i32
    return %c0_i32, %c0_i32_0 : i32, i32
  }
  func.func @transform_14(%arg0: i32) -> (i32, i32) {
    %c0_i32 = arith.constant 0 : i32
    %c0_i32_0 = arith.constant 0 : i32
    %c0_i32_1 = arith.constant 0 : i32
    return %c0_i32, %c0_i32_0 : i32, i32
  }
  func.func @transform_15(%arg0: i32) -> (i32, i32) {
    %c0_i32 = arith.constant 0 : i32
    %c0_i32_0 = arith.constant 0 : i32
    %c0_i32_1 = arith.constant 0 : i32
    return %c0_i32, %c0_i32_0 : i32, i32
  }
  func.func @transform_16(%arg0: i32) -> (i32, i32) {
    %c0_i32 = arith.constant 0 : i32
    %c0_i32_0 = arith.constant 0 : i32
    %c0_i32_1 = arith.constant 0 : i32
    return %c0_i32, %c0_i32_0 : i32, i32
  }
  func.func @transform_17(%arg0: i32) -> (i32, i32) {
    %c0_i32 = arith.constant 0 : i32
    %c0_i32_0 = arith.constant 0 : i32
    %c0_i32_1 = arith.constant 0 : i32
    return %c0_i32, %c0_i32_0 : i32, i32
  }
  func.func @transform_18(%arg0: i32) -> (i32, i32) {
    %c0_i32 = arith.constant 0 : i32
    %c0_i32_0 = arith.constant 0 : i32
    %c0_i32_1 = arith.constant 0 : i32
    return %c0_i32, %c0_i32_0 : i32, i32
  }
  func.func @transform_19(%arg0: i32) -> (i32, i32, i32) {
    %c0_i32 = arith.constant 0 : i32
    %c0_i32_0 = arith.constant 0 : i32
    %c0_i32_1 = arith.constant 0 : i32
    return %arg0, %c0_i32, %c0_i32_0 : i32, i32, i32
  }
}

</mosaic_0001>

<bundles_post_ra>
// kernel: tpu_custom_call.1
= control target key start
LH: loop header
LB: loop body
LE: loop exit
PB: predicated region body
PF: predicated region fallthrough
CT: control target
= control target key end

     0   :  { %s4302_s0 = inlined_call_operand.vmem [shape: f32[4,16,128], index: 0, kind: input, shape index: {}]   ;;  %s4303_s1 = inlined_call_operand.vmem [shape: f32[4,16,1], index: 1, kind: input, shape index: {}]   ;;  %s4304_s2 = inlined_call_operand.vmem [shape: f32[4,16,1], index: 2, kind: input, shape index: {}]   ;;  %s4305_s3 = inlined_call_operand.hbm [shape: bf16[4,16,16], index: 3, kind: input, shape index: {}]   ;;  %s4306_s4 = inlined_call_operand.vmem [shape: f32[1,128], index: 4, kind: input, shape index: {}]   ;;  %s4307_s5 = inlined_call_operand.vmem [shape: f32[1,128], index: 5, kind: input, shape index: {}]   ;;  %s4308_s6 = inlined_call_operand.vmem [shape: bf16[128,128], index: 6, kind: input, shape index: {}]   ;;  %s4309_s7 = inlined_call_operand.vmem [shape: f32[1,128], index: 7, kind: input, shape index: {}]   ;;  %s4310_s8 = inlined_call_operand.hbm [shape: bf16[128,128], index: 8, kind: input, shape index: {}]   ;;  %s4311_s9 = inlined_call_operand.vmem [shape: f32[1,128], index: 9, kind: input, shape index: {}]   ;;  %s4312_s10 = inlined_call_operand.hbm [shape: bf16[128,128], index: 10, kind: input, shape index: {}]   ;;  %s4313_s11 = inlined_call_operand.vmem [shape: f32[1,128], index: 11, kind: input, shape index: {}]   ;;  %s4314_s12 = inlined_call_operand.hbm [shape: bf16[128,128], index: 12, kind: input, shape index: {}]   ;;  %s4315_s13 = inlined_call_operand.vmem [shape: f32[1,128], index: 13, kind: input, shape index: {}]   ;;  %s4316_s14 = inlined_call_operand.hbm [shape: bf16[128,128], index: 14, kind: input, shape index: {}]   ;;  %s4317_s15 = inlined_call_operand.hbm [shape: bf16[128,128], index: 15, kind: input, shape index: {}]   ;;  %s4318_s16 = inlined_call_operand.hbm [shape: bf16[128,128], index: 16, kind: input, shape index: {}]   ;;  %s4319_s17 = inlined_call_operand.hbm [shape: bf16[128,128], index: 17, kind: input, shape index: {}]   ;;  %s4320_s18 = inlined_call_operand.vmem [shape: f32[1,128], index: 18, kind: input, shape index: {}]   ;;  %s4321_s19 = inlined_call_operand.hbm [shape: f32[2,2,128], index: 19, kind: output, shape index: {}]  }
   0x1   :  { %4330 = sst [smem:[#allocation24_spill]] %s4302_s0 }
   0x2   :  { %4331 = sst [smem:[#allocation25_spill]] %s4303_s1 }
   0x3   :  { %4332 = sst [smem:[#allocation26_spill]] %s4304_s2 }
   0x4   :  { %4333 = sst [smem:[#allocation27_spill]] %s4305_s3 }
   0x5   :  { %4334 = sst [smem:[#allocation28_spill]] %s4310_s8 }
   0x6   :  { %4335 = sst [smem:[#allocation29_spill]] %s4312_s10 }
   0x7   :  { %4336 = sst [smem:[#allocation30_spill]] %s4314_s12 }
   0x8   :  { %4337 = sst [smem:[#allocation31_spill]] %s4316_s14 }
   0x9   :  { %4338 = sst [smem:[#allocation32_spill]] %s4317_s15 }
   0xa   :  { %4339 = sst [smem:[#allocation33_spill]] %s4318_s16 }
   0xb   :  { %4340 = sst [smem:[#allocation34_spill]] %s4319_s17 }
   0xc   :  { %4341 = sst [smem:[#allocation35_spill]] %s4320_s18 }
   0xd   :  { %4342 = sst [smem:[#allocation36_spill]] %s4321_s19 }
   0xe   :  { %24 = vsyncpa [#allocation3], 0 }
   0xf   :  { %26 = vsyncpa [#allocation3 + $0x1], 0 }
  0x10   :  { %27 = vsyncpa [#allocation6], 0 }
  0x11   :  { %28 = vsyncpa [#allocation9], 0 }
  0x12   :  { %29 = vsyncpa [#allocation12], 0 }
  0x13   :  { %30 = vsyncpa [#allocation15], 0 }
  0x14   :  { %31 = vsyncpa [#allocation4], 0 }
  0x15   :  { %33 = vsyncpa [#allocation4 + $0x1], 0  ;;  %s3818_s0 = smov 0   ;;  %s3820_s30 = smov 0  }
  0x16   :  { %s3822_s20 = smov 0   ;;  %s3824_s21 = smov 0  }
  0x17 LB: > { %s3704_s1 = smov [#allocation5]   ;;  %s3839_s2 = sadd.s32 4294967295, %s3702_s21   ;;  %s3702_s21 = sphi %s3824_s21, %s4383_s21   ;;  %s3698_s20 = sphi %s3822_s20, %s4382_s20   ;;  %s3694_s30 = sphi %s3820_s30, %s4381_s30   ;;  %s3690_s0 = sphi %s3818_s0, %s4380_s0  }
  0x18   : > { %s513_s22 = sshll.u32 %s3704_s1, 4  ;;  %p2730_p0 = scmp.ge.s32.totalorder %s3702_s21, 1  ;;  %s514_s22 = int_to_ptr.vmem [resolvable:$true] %s513_s22 }
  0x19   : > { %p4326_p1 = scmp.eq.s32.totalorder %s3839_s2, 0  ;;  %p489_p2 = scmp.lt.s32.totalorder %s3702_s21, 3 }
  0x1a   : > { %s3705_s24 = smov [#allocation8]   ;;  %s3706_s26 = smov [#allocation11]  }
  0x1b   : > { %p3844_p3 = pnand %p2730_p0, %p489_p2  ;;  %s545_s25 = sshll.u32 %s3705_s24, 4  ;;  %s3857_s25 = int_to_ptr.vmem [resolvable:$true] %s545_s25 }
  0x1c   : > { %s574_s27 = sshll.u32 %s3706_s26, 4  ;;  %s3423_s29 = scalar_lea.vmem %s514_s22, 1024  ;;  %s3859_s27 = int_to_ptr.vmem [resolvable:$true] %s574_s27 }
  0x1d   : > { %s4343_s23 = scalar_select %p3844_p3, 1, 0 }
  0x1e   : > { %p3200_p5 = pneg %p3844_p3  ;;  %p3424_p8 = scmp.ne.s32.totalorder %s514_s22, %s3423_s29 }
  0x1f   : > { %p3431_p11 = scmp.lt.s32.totalorder %s514_s22, %s514_s22  ;;  %p3432_p12 = scmp.lt.s32.totalorder %s3423_s29, %s3423_s29 }
  0x20   : > { %p3853_p6 = pnand %p3200_p5, %p4326_p1 }
  0x21   : > { %p3433_p13 = por %p3432_p12, %p3431_p11 }
  0x22   : > { %p3863_p7 = pneg %p3853_p6 }
  0x24   : > { %p3426_p9 = pnand %p3424_p8, %p3863_p7 }
  0x26   : > { %p3427_p10 = pneg %p3426_p9 }
  0x28   : > { %p3434_p0 = pnand %p3433_p13, %p3427_p10 }
  0x2a   : > { %3437 = shalt.err (!%p3434_p0)
}
  0x2b   : > { %s4324_s1 = smov 64   ;;  %s4325_s24 = smov 4  }
  0x2c   : > { %s4346_s8 = sld [smem:[#allocation28_spill]]  ;;  %s3449_s18 = scalar_lea.vmem %s3857_s25, 1024 }
  0x2d   : > { %p3450_p2 = scmp.ne.s32.totalorder %s3857_s25, %s3449_s18  ;;  %p3457_p9 = scmp.lt.s32.totalorder %s3857_s25, %s3857_s25 }
  0x2e   : > { %p3458_p10 = scmp.lt.s32.totalorder %s3449_s18, %s3449_s18 }
  0x2f   : > { %p3452_p5 = pnand %p3450_p2, %p3863_p7 }
  0x30   : > { %p3459_p11 = por %p3458_p10, %p3457_p9 }
  0x31   : > { %p3453_p8 = pneg %p3452_p5 }
  0x32   : > { %3203 = dma.hbm_to_vmem [thread:$0]  (!%p3853_p6), %s4346_s8, 1024, %s514_s22, [#allocation6], %s4324_s1, %s4324_s1, %s4325_s24  }
  0x33   : > { %p3460_p12 = pnand %p3459_p11, %p3453_p8 }
  0x35   : > { %3463 = shalt.err (!%p3460_p12)
}
  0x36   : > { %s4347_s12 = sld [smem:[#allocation30_spill]]  ;;  %s3475_s22 = scalar_lea.vmem %s3859_s27, 1024 }
  0x37   : > { %p3476_p13 = scmp.ne.s32.totalorder %s3859_s27, %s3475_s22  ;;  %p3483_p5 = scmp.lt.s32.totalorder %s3859_s27, %s3859_s27 }
  0x38   : > { %p3484_p8 = scmp.lt.s32.totalorder %s3475_s22, %s3475_s22 }
  0x39   : > { %p3478_p0 = pnand %p3476_p13, %p3863_p7 }
  0x3a   : > { %p3485_p9 = por %p3484_p8, %p3483_p5 }
  0x3b   : > { %p3479_p2 = pneg %p3478_p0 }
  0x3c   : > { %3209 = dma.hbm_to_vmem [thread:$0]  (!%p3853_p6), %s4347_s12, 1024, %s3857_s25, [#allocation9], %s4324_s1, %s4324_s1, %s4325_s24  }
  0x3d   : > { %p3486_p10 = pnand %p3485_p9, %p3479_p2 }
  0x3f   : > { %3489 = shalt.err (!%p3486_p10)
}
  0x40   : > { %s4348_s15 = sld [smem:[#allocation32_spill]]  ;;  %s3709_s25 = smov [#allocation7]  }
  0x41   : > { %s529_s29 = sshll.u32 %s3709_s25, 4  ;;  %s3710_s19 = smov [#allocation10]   ;;  %s530_s29 = int_to_ptr.vmem [resolvable:$true] %s529_s29 }
  0x42   : > { %s561_s8 = sshll.u32 %s3710_s19, 4  ;;  %s3501_s22 = scalar_lea.vmem %s530_s29, 1024  ;;  %s562_s8 = int_to_ptr.vmem [resolvable:$true] %s561_s8 }
  0x43   : > { %p3502_p11 = scmp.ne.s32.totalorder %s530_s29, %s3501_s22  ;;  %p3509_p0 = scmp.lt.s32.totalorder %s530_s29, %s530_s29 }
  0x44   : > { %p3510_p2 = scmp.lt.s32.totalorder %s3501_s22, %s3501_s22 }
  0x45   : > { %p3504_p12 = pnand %p3502_p11, %p3863_p7 }
  0x46   : > { %3215 = dma.hbm_to_vmem [thread:$0]  (!%p3853_p6), %s4348_s15, 1024, %s3859_s27, [#allocation12], %s4324_s1, %s4324_s1, %s4325_s24  }
  0x47   : > { %p3505_p13 = pneg %p3504_p12  ;;  %p3511_p5 = por %p3510_p2, %p3509_p0 }
  0x49   : > { %p3512_p8 = pnand %p3511_p5, %p3505_p13 }
  0x4b   : > { %3515 = shalt.err (!%p3512_p8)
}
  0x4c   : > { %s4349_s10 = sld [smem:[#allocation29_spill]]  ;;  %s3527_s26 = scalar_lea.vmem %s562_s8, 1024 }
  0x4d   : > { %p3528_p9 = scmp.ne.s32.totalorder %s562_s8, %s3527_s26  ;;  %p3535_p12 = scmp.lt.s32.totalorder %s562_s8, %s562_s8 }
  0x4e   : > { %p3536_p0 = scmp.lt.s32.totalorder %s3527_s26, %s3527_s26 }
  0x4f   : > { %p3530_p10 = pnand %p3528_p9, %p3863_p7 }
  0x50   : > { %p3537_p13 = por %p3536_p0, %p3535_p12 }
  0x51   : > { %p3531_p11 = pneg %p3530_p10 }
  0x52   : > { %3206 = dma.hbm_to_vmem [thread:$0]  (!%p3853_p6), %s4349_s10, 1024, %s530_s29, [#allocation6], %s4324_s1, %s4324_s1, %s4325_s24  }
  0x53   : > { %p3538_p2 = pnand %p3537_p13, %p3531_p11 }
  0x55   : > { %3541 = shalt.err (!%p3538_p2)
}
  0x56   : > { %s4350_s14 = sld [smem:[#allocation31_spill]]  ;;  %s3711_s29 = smov [#allocation13]  }
  0x57   : > { %s587_s22 = sshll.u32 %s3711_s29, 4  ;;  %s3712_s27 = smov [#allocation14]   ;;  %s588_s22 = int_to_ptr.vmem [resolvable:$true] %s587_s22 }
  0x58   : > { %s600_s18 = sshll.u32 %s3712_s27, 4  ;;  %s3553_s10 = scalar_lea.vmem %s588_s22, 1024  ;;  %s601_s18 = int_to_ptr.vmem [resolvable:$true] %s600_s18 }
  0x59   : > { %p3554_p5 = scmp.ne.s32.totalorder %s588_s22, %s3553_s10  ;;  %p3561_p10 = scmp.lt.s32.totalorder %s588_s22, %s588_s22 }
  0x5a   : > { %p3562_p11 = scmp.lt.s32.totalorder %s3553_s10, %s3553_s10 }
  0x5b   : > { %p3556_p8 = pnand %p3554_p5, %p3863_p7 }
  0x5c   : > { %3212 = dma.hbm_to_vmem [thread:$0]  (!%p3853_p6), %s4350_s14, 1024, %s562_s8, [#allocation9], %s4324_s1, %s4324_s1, %s4325_s24  }
  0x5d   : > { %p3557_p9 = pneg %p3556_p8  ;;  %p3563_p12 = por %p3562_p11, %p3561_p10 }
  0x5f   : > { %p3564_p0 = pnand %p3563_p12, %p3557_p9 }
  0x61   : > { %3567 = shalt.err (!%p3564_p0)
}
  0x62   : > { %s4351_s16 = sld [smem:[#allocation33_spill]]  ;;  %s3579_s25 = scalar_lea.vmem %s601_s18, 1024 }
  0x63   : > { %p3580_p13 = scmp.ne.s32.totalorder %s601_s18, %s3579_s25  ;;  %p3587_p8 = scmp.lt.s32.totalorder %s601_s18, %s601_s18 }
  0x64   : > { %p3588_p10 = scmp.lt.s32.totalorder %s3579_s25, %s3579_s25 }
  0x65   : > { %p3582_p2 = pnand %p3580_p13, %p3863_p7 }
  0x66   : > { %p3589_p9 = por %p3588_p10, %p3587_p8 }
  0x67   : > { %p3583_p5 = pneg %p3582_p2 }
  0x68   : > { %3218 = dma.hbm_to_vmem [thread:$0]  (!%p3853_p6), %s4351_s16, 1024, %s588_s22, [#allocation12], %s4324_s1, %s4324_s1, %s4325_s24  }
  0x69   : > { %p3590_p11 = pnand %p3589_p9, %p3583_p5 }
  0x6b   : > { %3593 = shalt.err (!%p3590_p11)
}
  0x6c   : > { %s4352_s17 = sld [smem:[#allocation34_spill]]  ;;  %s2729_s3 = sadd.s32 4294967294, %s3702_s21  }
  0x6d   : > { %s3949_s28 = sadd.s32 1, %s3702_s21   ;;  %s124_s29 = sadd.s32 1, %s3698_s20 }
  0x6e   : > { %s121_s22 = ssub.s32 %s3702_s21, %s3949_s28  ;;  %p131_p7 = scmp.ne.s32.totalorder %s3698_s20, %s3694_s30 }
  0x6f   : > { %p122_p12 = scmp.eq.s32.totalorder %s121_s22, 0  ;;  %p132_p0 = scmp.eq.s32.totalorder %s3702_s21, 0 }
  0x70   : > { %p137_p13 = scmp.ne.s32.totalorder %s3694_s30, %s3690_s0  ;;  %p476_p2 = scmp.eq.s32.totalorder %s3839_s2, 1 }
  0x71   : > { %s3961_s27 = scalar_select %p122_p12, %s3698_s20, %s124_s29  }
  0x72   : > { %3221 = dma.hbm_to_vmem [thread:$0]  (!%p3853_p6), %s4352_s17, 1024, %s601_s18, [#allocation15], %s4324_s1, %s4324_s1, %s4325_s24  }
  0x73   : > { %4353 = sst [smem:[#allocation23_spill]] %s3961_s27  ;;  %p133_p5 = por %p132_p0, %p131_p7 }
  0x74   : > { %p3965_p8 = por %p4326_p1, %p137_p13  ;;  %p3969_p6 = por %p476_p2, %p131_p7 }
  0x75   : > { %p482_p10 = scmp.eq.s32.totalorder %s2729_s3, 1  ;;  %p3237_p9 = scmp.lt.s32.totalorder %s3702_s21, 2 }
  0x76   : > { %s4354_s8 = scalar_select %p3965_p8, 1, 0 }
  0x77   : > { %s4355_s18 = scalar_select %p3969_p6, 1, 0 }
  0x78   : > { %s647_s26 = sand.u32 1, %s3698_s20   ;;  %p3975_p11 = por %p482_p10, %p137_p13 }
  0x79   : > { %s2739_s10 = sshll.u32 %s647_s26, 4  ;;  %s2846_s19 = sshll.u32 %s3702_s21, 8 }
  0x7a   : > { %s4356_s25 = scalar_select %p3975_p11, 1, 0 }
  0x7b   : > { %s4357_s1 = sld [smem:[#allocation27_spill]]  ;;  %s651_s12 = scalar_lea.vmem [#allocation2], %s2739_s10 }
  0x7c   : > { %s659_s14 = sshll.u32 %s651_s12, 4  ;;  %p3985_p7 = pnand %p3237_p9, %p133_p5  ;;  %s3989_s14 = int_to_ptr.vmem [resolvable:$true] %s659_s14 }
  0x7d   : > { %s3991_s15 = scalar_lea.sflag [#allocation3], %s647_s26 }
  0x7e   : > { %p3596_p0 = pneg %p3985_p7 }
  0x81   : > { %s3983_s24 = scalar_lea.hbm %s4357_s1, %s2846_s19  ;;  %s3599_s10 = scalar_lea.hbm %s4357_s1, 512 }
  0x82   : > { %s3594_s16 = scalar_lea.hbm %s3983_s24, 256  ;;  %p3600_p5 = scmp.lt.s32.totalorder %s3983_s24, %s4357_s1 }
  0x83   : > { %p3595_p12 = scmp.ne.s32.totalorder %s3983_s24, %s3594_s16  ;;  %p3601_p10 = scmp.lt.s32.totalorder %s3599_s10, %s3594_s16 }
  0x85   : > { %p3597_p13 = pnand %p3596_p0, %p3595_p12  ;;  %p3602_p9 = por %p3601_p10, %p3600_p5 }
  0x87   : > { %p3598_p2 = pneg %p3597_p13 }
  0x89   : > { %p3603_p4 = pnand %p3602_p9, %p3598_p2 }
  0x8b   : > { %3606 = shalt.err (!%p3603_p4)
}
  0x8c   : > { %s3607_s26 = scalar_lea.vmem %s3989_s14, 256  ;;  %s3713_s17 = smov [#allocation2]  }
  0x8d   : > { %p3608_p1 = scmp.ne.s32.totalorder %s3989_s14, %s3607_s26  ;;  %s3612_s27 = sshll.u32 %s3713_s17, 4  ;;  %s3613_s27 = int_to_ptr.vmem [resolvable:$false] %s3612_s27 }
  0x8e   : > { %s3614_s19 = scalar_lea.vmem %s3613_s27, 512  ;;  %p3615_p13 = scmp.lt.s32.totalorder %s3989_s14, %s3613_s27 }
  0x8f   : > { %p3610_p11 = pnand %p3608_p1, %p3596_p0  ;;  %p3616_p6 = scmp.lt.s32.totalorder %s3614_s19, %s3607_s26 }
  0x91   : > { %p3611_p12 = pneg %p3610_p11  ;;  %p3617_p8 = por %p3616_p6, %p3615_p13 }
  0x93   : > { %p3618_p3 = pnand %p3617_p8, %p3611_p12 }
  0x95   : > { %3621 = shalt.err (!%p3618_p3)
}
  0x96   : > { %s4359_s16 = smov 4   ;;  %s4360_s29 = smov 64  }
  0x97   : > { %3225 = dma.hbm_to_vmem [thread:$0]  (!%p3985_p7), %s3983_s24, 256, %s3989_s14, %s3991_s15, %s4360_s29, %s4360_s29, %s4359_s16  }
  0x98   : > { %p4361_p1 = scmp.ne.s32.totalorder %s4343_s23, 0 }
  0x99   : > { %s4018_s17 = sand.u32 (!%p4361_p1), 1, %s3694_s30   ;;  %p4362_p3 = scmp.ne.s32.totalorder (!%p4361_p1), %s4354_s8, 0 }
  0x9a   : > { %671 = sbr.rel (%p4361_p1) target bundleno = 2137 (0x859), region = 96  ;;  %s2744_s27 = sshll.u32 (!%p4361_p1), %s4018_s17, 4 }
  0x9b   : > { %s674_s10 = scalar_lea.sflag (!%p4361_p1), [#allocation3], %s4018_s17  ;;  %s4022_s12 = scalar_lea.vmem (!%p4361_p1), [#allocation2], %s2744_s27 }
  0x9f   : > { %3665 = dma.done.wait (%p4362_p3), %s674_s10, 256  }
  0xa0   : > { %3667 = vsyncadd (%p4362_p3), %s674_s10, 4294967040  ;;  %p4363_p4 = scmp.eq.s32.totalorder %s3839_s2, 0 }
  0xa2   : > { %3669 = dma.done.wait (%p4363_p4), [#allocation6], 2048   ;;  %p4364_p8 = pmov %p4363_p4 }
  0xa3   : > { %p4365_p6 = pmov %p4363_p4 }
  0xa4   : > { %3671 = vsyncadd (%p4364_p8), [#allocation6], 4294965248 }
  0xa5   : > { %3673 = dma.done.wait (%p4365_p6), [#allocation9], 2048   ;;  %p4366_p11 = pmov %p4363_p4 }
  0xa6   : > { %p4367_p7 = pmov %p4363_p4 }
  0xa7   : > { %3675 = vsyncadd (%p4366_p11), [#allocation9], 4294965248 }
  0xa8   : > { %3677 = dma.done.wait (%p4367_p7), [#allocation12], 2048   ;;  %p4368_p0 = pmov %p4363_p4 }
  0xaa   : > { %3679 = vsyncadd (%p4368_p0), [#allocation12], 4294965248  ;;  %p4369_p2 = pmov %p4368_p0 }
  0xab   : > { %p4370_p5 = pmov %p4368_p0 }
  0xac   : > { %3681 = dma.done.wait (%p4369_p2), [#allocation15], 1024  }
  0xad   : > { %3683 = vsyncadd (%p4370_p5), [#allocation15], 4294966272  ;;  %s2753_s14 = sshll.u32 %s3839_s2, 1  ;;  %v3714_v0 = vmov 0   ;;  %s4371_s8 = sld [smem:[#allocation24_spill]]  ;;  %v3715_v13 = vmov 0.0  }
  0xae   : > { %p779_p10 = scmp.lt.s32.totalorder %s2753_s14, 3  ;;  %3291 = vset.pattern.permute.xlu1 %v3714_v0  ;;  %3290 = vset.pattern.permute.xlu0 %v3714_v0  ;;  %s4372_s19 = sld [smem:[#allocation25_spill]]  ;;  %vm3716_vm0 = vmmov 0   ;;  %v4082_v14 = vld [vmem:[%s4022_s12] sm:$0xff]   ;;  %vm917_vm1 = vcmask 130048   ;;  %v4088_v18 = vld [vmem:[%s4022_s12 + $0x8] sm:$0xff]  }
  0xaf   : > { %2948 = vmatprep.subr.bf16.mxu0 %v3715_v13  ;;  %2954 = vmatprep.subr.bf16.mxu1 %v3715_v13  ;;  %v914_v15 = vunpack.c.h.bf16 %v4082_v14  ;;  %v913_v17 = vunpack.c.l.bf16 %v4082_v14  ;;  %v915_v20 = vunpack.c.l.bf16 %v4088_v18  ;;  %v916_v22 = vunpack.c.h.bf16 %v4088_v18  ;;  %v2762_v56 = vld [vmem:[%s4306_s4] ss:$0 sm:$0xff]  ;;  %s2842_s22 = sshll.u32 %s3839_s2, 5  ;;  %s4375_s27 = sld [smem:[#allocation36_spill]] }
  0xb0   : > { %s4385_s14 = smov (!%p779_p10, %s2753_s14), 3  ;;  %2950 = vmatprep.mubr.msk.bf16.mxu0 %vm3716_vm0, %v3715_v13  ;;  %2956 = vmatprep.mubr.msk.bf16.mxu1 %vm3716_vm0, %v3715_v13  ;;  %v2763_v59 = vld [vmem:[%s4307_s5] ss:$0 sm:$0xff]  ;;  %vm2212_vm2 = vcmask 7168   ;;  %vm2345_vm3 = vcmask 1041409   ;;  %s2543_s12 = scalar_lea.sflag [#allocation4], %s4018_s17 }
  0xb1   : > { %s4045_s15 = sshll.u32 %s4385_s14, 4  ;;  %v921_v16 = vsel %vm917_vm1, %v914_v15, 0.0  ;;  %v918_v19 = vsel %vm917_vm1, %v913_v17, 0.0  ;;  %v924_v21 = vsel %vm917_vm1, %v915_v20, 0.0  ;;  %v927_v23 = vsel %vm917_vm1, %v916_v22, 0.0  ;;  %s4373_s14 = sld [smem:[#allocation26_spill]] }
  0xb2   : > { %p4376_p12 = scmp.ne.s32.totalorder %s4355_s18, 0  ;;  %s3717_s2 = smov [#allocation16]  }
  0xb3   : > { %s783_s3 = scalar_lea.vmem %s4371_s8, %s4045_s15 }
  0xb4   : > { %v4051_v1 = vld [vmem:[%s783_s3 + $0x10] sm:$0xff]  ;;  %v4053_v2 = vld [vmem:[%s783_s3] sm:$0xff]  ;;  %v4057_v3 = vld [vmem:[%s783_s3 + $0x18] sm:$0xff]  ;;  %s790_s16 = scalar_lea.vmem %s4372_s19, %s4045_s15 }
  0xb5   : > { %809 = vadd.xlane.f32.xlu1 %v4051_v1  ;;  %805 = vadd.xlane.f32.xlu0 %v4053_v2  ;;  %v4059_v4 = vld [vmem:[%s783_s3 + $0x8] sm:$0xff]  ;;  %v817_v6 = vmul.f32 %v4053_v2, %v4053_v2  ;;  %v820_v7 = vmul.f32 %v4057_v3, %v4057_v3  ;;  %v819_v8 = vmul.f32 %v4051_v1, %v4051_v1  ;;  %v881_v10 = vld [vmem:[%s790_s16 + $0x10] sm:$0xff]  ;;  %v879_v11 = vld [vmem:[%s790_s16] sm:$0xff]  ;;  %s4374_s3 = sld [smem:[#allocation35_spill]]  ;;  %s4265_s10 = scalar_lea.hbm %s4375_s27, %s2842_s22 }
  0xb6   : > { %v818_v5 = vmul.f32 %v4059_v4, %v4059_v4  ;;  %v880_v9 = vld [vmem:[%s790_s16 + $0x8] sm:$0xff]  ;;  %v882_v12 = vld [vmem:[%s790_s16 + $0x18] sm:$0xff] }
  0xb7   : > { %s797_s23 = scalar_lea.vmem %s4373_s14, %s4045_s15  ;;  %s2752_s15 = sshll.u32 %s4018_s17, 1 }
  0xb8   : > { %s777_s26 = scalar_lea.vmem [#allocation16], %s2752_s15 }
  0xb9   : > { %811 = vadd.xlane.f32.xlu1 %v4057_v3  ;;  %807 = vadd.xlane.f32.xlu0 %v4059_v4  ;;  %s2556_s19 = sshll.u32 %s777_s26, 4  ;;  %s2557_s19 = int_to_ptr.vmem [resolvable:$true] %s2556_s19 }
  0xba   : > { %s3622_s14 = scalar_lea.vmem %s2557_s19, 32 }
  0xbb   : > { %p3623_p9 = scmp.ne.s32.totalorder %s2557_s19, %s3622_s14 }
  0xbd   : > { %823 = vadd.xlane.f32.xlu1 %v818_v5  ;;  %821 = vadd.xlane.f32.xlu0 %v817_v6  ;;  %p3624_p13 = pnand %p3623_p9, %p4376_p12 }
  0xbf   : > { %p3625_p1 = pneg %p3624_p13 }
  0xc1   : > { %827 = vadd.xlane.f32.xlu1 %v820_v7  ;;  %825 = vadd.xlane.f32.xlu0 %v819_v8 }
  0xd2   : > { %890 = vperm.xlu1 %3291, %v880_v9  }
  0xd6   : > { %895 = vperm.xlu1 %3291, %v881_v10  }
  0xd7   : > { %885 = vperm.xlu0 %3290, %v879_v11  }
  0xda   : > { %900 = vperm.xlu1 %3291, %v882_v12  }
  0xf6   : > { %922 = vadd.xlane.f32.xlu0 %v921_v16 }
  0xfe   : > { %919 = vadd.xlane.f32.xlu1 %v918_v19 }
 0x102   : > { %925 = vadd.xlane.f32.xlu1 %v924_v21 }
 0x106   : > { %928 = vadd.xlane.f32.xlu1 %v927_v23  ;;  %v3295_v23 = vld [vmem:[#allocation5 + $0x38] sm:$0xff]  }
 0x13e   : > { %v810_v24 = vpop.xlane.xlu1 %809  ;;  %v806_v25 = vpop.xlane.xlu0 %805 }
 0x13f   : > { %v813_v26 = vmul.f32 0.010416667, %v806_v25  ;;  %v815_v37 = vmul.f32 0.010416667, %v810_v24  ;;  %v3296_v24 = vld [vmem:[%s4308_s6 + $0x30] sm:$0xff]  }
 0x141   : > { %v833_v30 = vmul.f32 %v813_v26, %v813_v26  ;;  %v835_v46 = vmul.f32 %v815_v37, %v815_v37  ;;  %v841_v55 = vsub.f32 %v4053_v2, %v813_v26  ;;  %v843_v0 = vsub.f32 %v4051_v1, %v815_v37  ;;  %v3297_v26 = vld [vmem:[#allocation5 + $0x30] sm:$0xff]   ;;  %v3310_v37 = vld [vmem:[#allocation7 + $0x38] sm:$0xff]  }
 0x142   : > { %v812_v27 = vpop.xlane.xlu1 %811  ;;  %v808_v28 = vpop.xlane.xlu0 %807 }
 0x143   : > { %v814_v29 = vmul.f32 0.010416667, %v808_v28  ;;  %v816_v33 = vmul.f32 0.010416667, %v812_v27  ;;  %v3298_v27 = vld [vmem:[%s4308_s6 + $0x28] sm:$0xff]  }
 0x144   : > { %v3299_v28 = vld [vmem:[#allocation5 + $0x28] sm:$0xff]  }
 0x145   : > { %v834_v34 = vmul.f32 %v814_v29, %v814_v29  ;;  %v836_v42 = vmul.f32 %v816_v33, %v816_v33  ;;  %v842_v53 = vsub.f32 %v4059_v4, %v814_v29  ;;  %v844_v61 = vsub.f32 %v4057_v3, %v816_v33  ;;  %v3294_v3 = vld [vmem:[%s4308_s6 + $0x38] sm:$0xff]   ;;  %v3301_v29 = vld [vmem:[#allocation5 + $0x20] sm:$0xff]   ;;  %v3306_v33 = vld [vmem:[%s4308_s6 + $0x8] sm:$0xff]  }
 0x146   : > { %v824_v31 = vpop.xlane.xlu1 %823  ;;  %v822_v32 = vpop.xlane.xlu0 %821 }
 0x147   : > { %v830_v35 = vmul.f32 0.010416667, %v824_v31  ;;  %v829_v36 = vmul.f32 0.010416667, %v822_v32  ;;  %v3304_v31 = vld [vmem:[%s4308_s6 + $0x10] sm:$0xff]  }
 0x148   : > { %v3305_v32 = vld [vmem:[#allocation5 + $0x10] sm:$0xff]  }
 0x149   : > { %v838_v38 = vsub.f32 %v830_v35, %v834_v34  ;;  %v837_v39 = vsub.f32 %v829_v36, %v833_v30  ;;  %v3302_v30 = vld [vmem:[%s4308_s6 + $0x18] sm:$0xff]   ;;  %v3307_v34 = vld [vmem:[#allocation5 + $0x8] sm:$0xff]   ;;  %v3308_v35 = vld [vmem:[%s4308_s6] sm:$0xff]  }
 0x14a   : > { %v828_v40 = vpop.xlane.xlu1 %827  ;;  %v826_v41 = vpop.xlane.xlu0 %825  ;;  %v3309_v36 = vld [vmem:[#allocation5] sm:$0xff]  }
 0x14b   : > { %v846_v43 = vadd.f32 1e-05, %v838_v38  ;;  %v845_v44 = vadd.f32 1e-05, %v837_v39  ;;  %v832_v45 = vmul.f32 0.010416667, %v828_v40 }
 0x14c   : > { %v831_v47 = vmul.f32 0.010416667, %v826_v41  ;;  %v3311_v38 = vld [vmem:[#allocation8 + $0x38] sm:$0xff]  }
 0x14d   : > { %3360 = vrsqrt.f32 %v846_v43  ;;  %v840_v48 = vsub.f32 %v832_v45, %v836_v42 }
 0x14e   : > { %3362 = vrsqrt.f32 %v845_v44  ;;  %v839_v49 = vsub.f32 %v831_v47, %v835_v46  ;;  %v891_v52 = vpop.permute.xlu1 %890 }
 0x14f   : > { %v848_v50 = vadd.f32 1e-05, %v840_v48 }
 0x150   : > { %v847_v51 = vadd.f32 1e-05, %v839_v49 }
 0x151   : > { %3364 = vrsqrt.f32 %v848_v50 }
 0x152   : > { %3366 = vrsqrt.f32 %v847_v51  ;;  %v896_v4 = vpop.permute.xlu1 %895  ;;  %v886_v8 = vpop.permute.xlu0 %885 }
 0x156   : > { %v901_v20 = vpop.permute.xlu1 %900 }
 0x15a   : > { %v3361_v54 = vpop.eup %3360 }
 0x15b   : > { %v3363_v57 = vpop.eup %3362  ;;  %v854_v58 = vmul.f32 %v3361_v54, %v842_v53 }
 0x15c   : > { %v853_v60 = vmul.f32 %v3363_v57, %v841_v55 }
 0x15d   : > { %v865_v62 = vmul.f32 %v2762_v56, %v854_v58 }
 0x15e   : > { %v3365_v63 = vpop.eup %3364  ;;  %v864_v5 = vmul.f32 %v2762_v56, %v853_v60 }
 0x15f   : > { %v3367_v2 = vpop.eup %3366  ;;  %v876_v6 = vadd.f32 %v2763_v59, %v865_v62  ;;  %v856_v7 = vmul.f32 %v3365_v63, %v844_v61 }
 0x160   : > { %v855_v9 = vmul.f32 %v3367_v2, %v843_v0  ;;  %v875_v10 = vadd.f32 %v2763_v59, %v864_v5  ;;  %v3313_v5 = vld [vmem:[#allocation8 + $0x30] sm:$0xff]   ;;  %v3314_v2 = vld [vmem:[#allocation7 + $0x28] sm:$0xff]  }
 0x161   : > { %v904_v11 = vmul.f32 %v891_v52, %v876_v6  ;;  %v867_v12 = vmul.f32 %v2762_v56, %v856_v7  ;;  %v3315_v6 = vld [vmem:[#allocation8 + $0x28] sm:$0xff]   ;;  %v3316_v7 = vld [vmem:[#allocation7 + $0x20] sm:$0xff]  }
 0x162   : > { %v866_v15 = vmul.f32 %v2762_v56, %v855_v9  ;;  %v903_v16 = vmul.f32 %v886_v8, %v875_v10  ;;  %v3317_v8 = vld [vmem:[#allocation8 + $0x20] sm:$0xff]   ;;  %v3318_v9 = vld [vmem:[#allocation7 + $0x18] sm:$0xff]  }
 0x163   : > { %v878_v17 = vadd.f32 %v2763_v59, %v867_v12  ;;  %v3319_v10 = vld [vmem:[#allocation8 + $0x18] sm:$0xff]   ;;  %v3321_v12 = vld [vmem:[#allocation8 + $0x10] sm:$0xff]  }
 0x164   : > { %v877_v19 = vadd.f32 %v2763_v59, %v866_v15  ;;  %v907_v1 = vpack.c.bf16 %v904_v11, %v903_v16  ;;  %v3320_v11 = vld [vmem:[#allocation7 + $0x10] sm:$0xff]   ;;  %v3322_v15 = vld [vmem:[#allocation7 + $0x8] sm:$0xff]  }
 0x165   : > { %v906_v21 = vmul.f32 %v901_v20, %v878_v17  ;;  %v3323_v16 = vld [vmem:[#allocation8 + $0x8] sm:$0xff]   ;;  %v3324_v17 = vld [vmem:[#allocation7] sm:$0xff]   ;;  %v3327_v20 = vld [vmem:[#allocation11 + $0x38] sm:$0xff]  }
 0x166   : > { %v905_v22 = vmul.f32 %v896_v4, %v877_v19  ;;  %2949 = vmatpush3.bf16.msra.mxu0 %v907_v1  ;;  %v3312_v4 = vld [vmem:[#allocation7 + $0x30] sm:$0xff]   ;;  %v3326_v19 = vld [vmem:[#allocation10 + $0x38] sm:$0xff]  }
 0x167   : > { %2960 = vmatprep.subr.bf16.mxu0 %v3294_v3 }
 0x168   : > { %v908_v25 = vpack.c.bf16 %v906_v21, %v905_v22 }
 0x169   : > { %2951 = vmatmul.mubr.msk.bf16.vlgmr.msra.gmra.mxu0 %vm917_vm1, %v4082_v14  ;;  %v3300_v14 = vld [vmem:[%s4308_s6 + $0x20] sm:$0xff]  }
 0x16a   : > { %2955 = vmatpush3.bf16.msra.mxu1 %v908_v25  ;;  %2961 = vmatpush3.bf16.msra.mxu0 %v3294_v3  ;;  %v3325_v3 = vld [vmem:[#allocation8] sm:$0xff]  }
 0x16b   : > { %2980 = vmatprep.subr.bf16.mxu1 %v3295_v23  ;;  %2962 = vmatprep.subr.bf16.mxu0 %v3296_v24  ;;  %v2777_v25 = vld [vmem:[%s4311_s9] ss:$0 sm:$0xff] }
 0x16d   : > { %2957 = vmatmul.mubr.msk.bf16.vlgmr.msra.gmra.mxu1 %vm917_vm1, %v4088_v18  ;;  %v3303_v18 = vld [vmem:[#allocation5 + $0x18] sm:$0xff]  }
 0x16e   : > { %2981 = vmatpush3.bf16.msra.mxu1 %v3295_v23  ;;  %2963 = vmatpush3.bf16.msra.mxu0 %v3296_v24  ;;  %v2768_v24 = vld [vmem:[%s4309_s7] ss:$0 sm:$0xff] }
 0x16f   : > { %2982 = vmatprep.subr.bf16.mxu1 %v3297_v26  ;;  %2964 = vmatprep.subr.bf16.mxu0 %v3298_v27 }
 0x172   : > { %2983 = vmatpush3.bf16.msra.mxu1 %v3297_v26  ;;  %2965 = vmatpush3.bf16.msra.mxu0 %v3298_v27 }
 0x173   : > { %2984 = vmatprep.subr.bf16.mxu1 %v3299_v28  ;;  %2966 = vmatprep.subr.bf16.mxu0 %v3300_v14 }
 0x176   : > { %2985 = vmatpush3.bf16.msra.mxu1 %v3299_v28  ;;  %2967 = vmatpush3.bf16.msra.mxu0 %v3300_v14 }
 0x177   : > { %2986 = vmatprep.subr.bf16.mxu1 %v3301_v29  ;;  %2968 = vmatprep.subr.bf16.mxu0 %v3302_v30 }
 0x17a   : > { %2987 = vmatpush3.bf16.msra.mxu1 %v3301_v29  ;;  %2969 = vmatpush3.bf16.msra.mxu0 %v3302_v30 }
 0x17b   : > { %2988 = vmatprep.subr.bf16.mxu1 %v3303_v18  ;;  %2970 = vmatprep.subr.bf16.mxu0 %v3304_v31 }
 0x17e   : > { %2989 = vmatpush3.bf16.msra.mxu1 %v3303_v18  ;;  %2971 = vmatpush3.bf16.msra.mxu0 %v3304_v31 }
 0x17f   : > { %2990 = vmatprep.subr.bf16.mxu1 %v3305_v32  ;;  %2972 = vmatprep.subr.bf16.mxu0 %v3306_v33  ;;  %v923_v41 = vpop.xlane.xlu0 %922 }
 0x180   : > { %v931_v42 = vadd.f32 1.0, %v923_v41 }
 0x182   : > { %2991 = vmatpush3.bf16.msra.mxu1 %v3305_v32  ;;  %2973 = vmatpush3.bf16.msra.mxu0 %v3306_v33  ;;  %3368 = vrcp.f32 %v931_v42 }
 0x183   : > { %2992 = vmatprep.subr.bf16.mxu1 %v3307_v34  ;;  %2974 = vmatprep.subr.bf16.mxu0 %v3308_v35 }
 0x186   : > { %2993 = vmatpush3.bf16.msra.mxu1 %v3307_v34  ;;  %2975 = vmatpush3.bf16.msra.mxu0 %v3308_v35 }
 0x187   : > { %2994 = vmatprep.subr.bf16.mxu1 %v3309_v36  ;;  %3000 = vmatprep.subr.bf16.mxu0 %v3310_v37  ;;  %v920_v39 = vpop.xlane.xlu1 %919 }
 0x188   : > { %v930_v43 = vadd.f32 1.0, %v920_v39 }
 0x18a   : > { %2995 = vmatpush3.bf16.msra.mxu1 %v3309_v36  ;;  %3370 = vrcp.f32 %v930_v43 }
 0x18b   : > { %3020 = vmatprep.subr.bf16.mxu1 %v3311_v38  ;;  %v926_v40 = vpop.xlane.xlu1 %925 }
 0x18c   : > { %v932_v45 = vadd.f32 1.0, %v926_v40 }
 0x18e   : > { %3372 = vrcp.f32 %v932_v45 }
 0x18f   : > { %v929_v44 = vpop.xlane.xlu1 %928  ;;  %v3369_v48 = vpop.eup %3368 }
 0x190   : > { %v933_v46 = vadd.f32 1.0, %v929_v44 }
 0x192   : > { %3374 = vrcp.f32 %v933_v46 }
 0x197   : > { %v3371_v49 = vpop.eup %3370 }
 0x19b   : > { %v3373_v53 = vpop.eup %3372 }
 0x19f   : > { %v3375_v56 = vpop.eup %3374 }
 0x229   : > { %v976_v47 = vpop.f32.mrf.mxu0 }
 0x22a   : > { %v1036_v54 = vmul.f32 %v3371_v49, %v976_v47  ;;  %v3329_v49 = vld [vmem:[#allocation11 + $0x30] sm:$0xff]  }
 0x22b   : > { %v2952_v50 = vpop.f32.mrf.mxu0 }
 0x22c   : > { %v3330_v50 = vld [vmem:[#allocation10 + $0x28] sm:$0xff]  }
 0x22d   : > { %v979_v51 = vpop.f32.mrf.mxu0  ;;  %v1025_v52 = vpop.f32.mrf.mxu1 }
 0x22e   : > { %v1037_v55 = vmul.f32 %v3369_v48, %v979_v51  ;;  %v1038_v61 = vmul.f32 %v3373_v53, %v1025_v52  ;;  %v3328_v48 = vld [vmem:[#allocation10 + $0x30] sm:$0xff]   ;;  %v3331_v51 = vld [vmem:[#allocation11 + $0x28] sm:$0xff]   ;;  %v3332_v52 = vld [vmem:[#allocation10 + $0x20] sm:$0xff]  }
 0x22f   : > { %v2953_v57 = vpop.f32.mrf.mxu0  ;;  %v2958_v58 = vpop.f32.mrf.mxu1  ;;  %v3333_v53 = vld [vmem:[#allocation11 + $0x20] sm:$0xff]  }
 0x230   : > { %v1040_v59 = vpack.c.bf16 %v1037_v55, %v1036_v54  ;;  %v3334_v54 = vld [vmem:[#allocation10 + $0x18] sm:$0xff]   ;;  %v3337_v57 = vld [vmem:[#allocation11 + $0x10] sm:$0xff]   ;;  %v3338_v58 = vld [vmem:[#allocation10 + $0x8] sm:$0xff]  }
 0x231   : > { %v1028_v60 = vpop.f32.mrf.mxu1  ;;  %v3335_v55 = vld [vmem:[#allocation11 + $0x18] sm:$0xff]  }
 0x232   : > { %v1039_v62 = vmul.f32 %v3375_v56, %v1028_v60  ;;  %2976 = vmatprep.mubr.bf16.mxu0 %v1040_v59  ;;  %2996 = vmatprep.mubr.bf16.mxu1 %v1040_v59  ;;  %v3336_v56 = vld [vmem:[#allocation10 + $0x10] sm:$0xff]   ;;  %v3339_v59 = vld [vmem:[#allocation11 + $0x8] sm:$0xff]   ;;  %v3340_v60 = vld [vmem:[#allocation10] sm:$0xff]  }
 0x233   : > { %v2959_v63 = vpop.f32.mrf.mxu1 }
 0x234   : > { %v1041_v0 = vpack.c.bf16 %v1039_v62, %v1038_v61  ;;  %v3341_v61 = vld [vmem:[#allocation11] sm:$0xff]  }
 0x236   : > { %2977 = vmatmul.mubr.bf16.vlgmr.msra.gmra.mxu0 %v1041_v0  ;;  %2997 = vmatmul.mubr.bf16.vlgmr.msra.gmra.mxu1 %v1041_v0 }
 0x237   : > { %3001 = vmatpush3.bf16.msra.mxu0 %v3310_v37  ;;  %3021 = vmatpush3.bf16.msra.mxu1 %v3311_v38 }
 0x238   : > { %3002 = vmatprep.subr.bf16.mxu0 %v3312_v4  ;;  %3022 = vmatprep.subr.bf16.mxu1 %v3313_v5 }
 0x23b   : > { %3003 = vmatpush3.bf16.msra.mxu0 %v3312_v4  ;;  %3023 = vmatpush3.bf16.msra.mxu1 %v3313_v5  ;;  %v2786_v5 = vld [vmem:[%s4313_s11] ss:$0 sm:$0xff] }
 0x23c   : > { %3004 = vmatprep.subr.bf16.mxu0 %v3314_v2  ;;  %3024 = vmatprep.subr.bf16.mxu1 %v3315_v6 }
 0x23f   : > { %3005 = vmatpush3.bf16.msra.mxu0 %v3314_v2  ;;  %3025 = vmatpush3.bf16.msra.mxu1 %v3315_v6  ;;  %v2795_v2 = vld [vmem:[%s4315_s13] ss:$0 sm:$0xff] }
 0x240   : > { %3006 = vmatprep.subr.bf16.mxu0 %v3316_v7  ;;  %3026 = vmatprep.subr.bf16.mxu1 %v3317_v8 }
 0x243   : > { %3007 = vmatpush3.bf16.msra.mxu0 %v3316_v7  ;;  %3027 = vmatpush3.bf16.msra.mxu1 %v3317_v8 }
 0x244   : > { %3008 = vmatprep.subr.bf16.mxu0 %v3318_v9  ;;  %3028 = vmatprep.subr.bf16.mxu1 %v3319_v10 }
 0x247   : > { %3009 = vmatpush3.bf16.msra.mxu0 %v3318_v9  ;;  %3029 = vmatpush3.bf16.msra.mxu1 %v3319_v10 }
 0x248   : > { %3010 = vmatprep.subr.bf16.mxu0 %v3320_v11  ;;  %3030 = vmatprep.subr.bf16.mxu1 %v3321_v12 }
 0x24b   : > { %3011 = vmatpush3.bf16.msra.mxu0 %v3320_v11  ;;  %3031 = vmatpush3.bf16.msra.mxu1 %v3321_v12 }
 0x24c   : > { %3012 = vmatprep.subr.bf16.mxu0 %v3322_v15  ;;  %3032 = vmatprep.subr.bf16.mxu1 %v3323_v16 }
 0x24f   : > { %3013 = vmatpush3.bf16.msra.mxu0 %v3322_v15  ;;  %3033 = vmatpush3.bf16.msra.mxu1 %v3323_v16 }
 0x250   : > { %3014 = vmatprep.subr.bf16.mxu0 %v3324_v17  ;;  %3034 = vmatprep.subr.bf16.mxu1 %v3325_v3 }
 0x253   : > { %3015 = vmatpush3.bf16.msra.mxu0 %v3324_v17  ;;  %3035 = vmatpush3.bf16.msra.mxu1 %v3325_v3 }
 0x254   : > { %3040 = vmatprep.subr.bf16.mxu0 %v3326_v19  ;;  %3060 = vmatprep.subr.bf16.mxu1 %v3327_v20 }
 0x2f6   : > { %v2978_v1 = vpop.f32.mrf.mxu0  ;;  %v2998_v21 = vpop.f32.mrf.mxu1 }
 0x2f7   : > { %v1156_v18 = vadd.f32 %v2978_v1, %v2768_v24  ;;  %v1280_v31 = vadd.f32 %v2998_v21, %v2777_v25 }
 0x2f8   : > { %v1147_v22 = vpop.f32.mrf.mxu0  ;;  %v1271_v23 = vpop.f32.mrf.mxu1 }
 0x2f9   : > { %v1148_v28 = vadd.f32 %v2768_v24, %v1147_v22  ;;  %v1272_v14 = vadd.f32 %v2777_v25, %v1271_v23  ;;  %v1164_v42 = vmax.f32 %v1156_v18, 0.0  ;;  %v1288_v43 = vmax.f32 %v1280_v31, 0.0 }
 0x2fa   : > { %v2979_v26 = vpop.f32.mrf.mxu0  ;;  %v2999_v27 = vpop.f32.mrf.mxu1 }
 0x2fb   : > { %v1159_v29 = vadd.f32 %v2979_v26, %v2768_v24  ;;  %v1283_v30 = vadd.f32 %v2999_v27, %v2777_v25  ;;  %v1162_v38 = vmax.f32 %v1148_v28, 0.0  ;;  %v1286_v39 = vmax.f32 %v1272_v14, 0.0 }
 0x2fc   : > { %v1150_v32 = vpop.f32.mrf.mxu0  ;;  %v1274_v33 = vpop.f32.mrf.mxu1 }
 0x2fd   : > { %v1151_v34 = vadd.f32 %v2768_v24, %v1150_v32  ;;  %v1275_v35 = vadd.f32 %v2777_v25, %v1274_v33  ;;  %v1165_v36 = vmax.f32 %v1159_v29, 0.0  ;;  %v1289_v37 = vmax.f32 %v1283_v30, 0.0 }
 0x2ff   : > { %v1163_v40 = vmax.f32 %v1151_v34, 0.0  ;;  %v1287_v41 = vmax.f32 %v1275_v35, 0.0  ;;  %v1291_v46 = vpack.c.bf16 %v1165_v36, %v1164_v42  ;;  %v1417_v47 = vpack.c.bf16 %v1289_v37, %v1288_v43 }
 0x301   : > { %v1290_v44 = vpack.c.bf16 %v1163_v40, %v1162_v38  ;;  %v1416_v45 = vpack.c.bf16 %v1287_v41, %v1286_v39 }
 0x303   : > { %3016 = vmatprep.mubr.bf16.mxu0 %v1290_v44  ;;  %3036 = vmatprep.mubr.bf16.mxu1 %v1416_v45 }
 0x304   : > { %3017 = vmatmul.mubr.bf16.vlgmr.msra.gmra.mxu0 %v1291_v46  ;;  %3037 = vmatmul.mubr.bf16.vlgmr.msra.gmra.mxu1 %v1417_v47 }
 0x305   : > { %3041 = vmatpush3.bf16.msra.mxu0 %v3326_v19  ;;  %3061 = vmatpush3.bf16.msra.mxu1 %v3327_v20 }
 0x306   : > { %3042 = vmatprep.subr.bf16.mxu0 %v3328_v48  ;;  %3062 = vmatprep.subr.bf16.mxu1 %v3329_v49 }
 0x309   : > { %3043 = vmatpush3.bf16.msra.mxu0 %v3328_v48  ;;  %3063 = vmatpush3.bf16.msra.mxu1 %v3329_v49 }
 0x30a   : > { %3044 = vmatprep.subr.bf16.mxu0 %v3330_v50  ;;  %3064 = vmatprep.subr.bf16.mxu1 %v3331_v51 }
 0x30d   : > { %3045 = vmatpush3.bf16.msra.mxu0 %v3330_v50  ;;  %3065 = vmatpush3.bf16.msra.mxu1 %v3331_v51 }
 0x30e   : > { %3046 = vmatprep.subr.bf16.mxu0 %v3332_v52  ;;  %3066 = vmatprep.subr.bf16.mxu1 %v3333_v53 }
 0x311   : > { %3047 = vmatpush3.bf16.msra.mxu0 %v3332_v52  ;;  %3067 = vmatpush3.bf16.msra.mxu1 %v3333_v53 }
 0x312   : > { %3048 = vmatprep.subr.bf16.mxu0 %v3334_v54  ;;  %3068 = vmatprep.subr.bf16.mxu1 %v3335_v55 }
 0x315   : > { %3049 = vmatpush3.bf16.msra.mxu0 %v3334_v54  ;;  %3069 = vmatpush3.bf16.msra.mxu1 %v3335_v55 }
 0x316   : > { %3050 = vmatprep.subr.bf16.mxu0 %v3336_v56  ;;  %3070 = vmatprep.subr.bf16.mxu1 %v3337_v57 }
 0x319   : > { %3051 = vmatpush3.bf16.msra.mxu0 %v3336_v56  ;;  %3071 = vmatpush3.bf16.msra.mxu1 %v3337_v57 }
 0x31a   : > { %3052 = vmatprep.subr.bf16.mxu0 %v3338_v58  ;;  %3072 = vmatprep.subr.bf16.mxu1 %v3339_v59 }
 0x31d   : > { %3053 = vmatpush3.bf16.msra.mxu0 %v3338_v58  ;;  %3073 = vmatpush3.bf16.msra.mxu1 %v3339_v59 }
 0x31e   : > { %3054 = vmatprep.subr.bf16.mxu0 %v3340_v60  ;;  %3074 = vmatprep.subr.bf16.mxu1 %v3341_v61 }
 0x321   : > { %3055 = vmatpush3.bf16.msra.mxu0 %v3340_v60  ;;  %3075 = vmatpush3.bf16.msra.mxu1 %v3341_v61 }
 0x322   : > { %3080 = vmatprep.subr.bf16.mxu0 %v3715_v13  ;;  %3086 = vmatprep.subr.bf16.mxu1 %v3715_v13 }
 0x3c4   : > { %v3018_v62 = vpop.f32.mrf.mxu0  ;;  %v3038_v63 = vpop.f32.mrf.mxu1 }
 0x3c5   : > { %v1406_v12 = vadd.f32 %v3018_v62, %v2786_v5  ;;  %v1532_v15 = vadd.f32 %v3038_v63, %v2795_v2 }
 0x3c6   : > { %v1397_v0 = vpop.f32.mrf.mxu0  ;;  %v1523_v4 = vpop.f32.mrf.mxu1 }
 0x3c7   : > { %v1398_v8 = vadd.f32 %v2786_v5, %v1397_v0  ;;  %v1524_v9 = vadd.f32 %v2795_v2, %v1523_v4  ;;  %v1414_v25 = vmax.f32 %v1406_v12, 0.0  ;;  %v1540_v26 = vmax.f32 %v1532_v15, 0.0 }
 0x3c8   : > { %v3019_v6 = vpop.f32.mrf.mxu0  ;;  %v3039_v7 = vpop.f32.mrf.mxu1 }
 0x3c9   : > { %v1409_v10 = vadd.f32 %v3019_v6, %v2786_v5  ;;  %v1535_v11 = vadd.f32 %v3039_v7, %v2795_v2  ;;  %v1412_v21 = vmax.f32 %v1398_v8, 0.0  ;;  %v1538_v22 = vmax.f32 %v1524_v9, 0.0 }
 0x3ca   : > { %v1400_v16 = vpop.f32.mrf.mxu0  ;;  %v1526_v17 = vpop.f32.mrf.mxu1 }
 0x3cb   : > { %v1401_v3 = vadd.f32 %v2786_v5, %v1400_v16  ;;  %v1527_v19 = vadd.f32 %v2795_v2, %v1526_v17  ;;  %v1415_v20 = vmax.f32 %v1409_v10, 0.0  ;;  %v1541_v1 = vmax.f32 %v1535_v11, 0.0  ;;  %v4185_v16 = vld [vmem:[%s797_s23 + $0x8] sm:$0xff]  ;;  %v4187_v17 = vld [vmem:[%s797_s23] sm:$0xff] }
 0x3cd   : > { %v1413_v23 = vmax.f32 %v1401_v3, 0.0  ;;  %v1539_v24 = vmax.f32 %v1527_v19, 0.0  ;;  %v4149_v14 = vpack.c.bf16 %v1415_v20, %v1414_v25  ;;  %v1545_v29 = vpack.c.bf16 %v1541_v1, %v1540_v26  ;;  %v4189_v20 = vld [vmem:[%s797_s23 + $0x10] sm:$0xff]  ;;  %v4191_v1 = vld [vmem:[%s797_s23 + $0x18] sm:$0xff]  ;;  %s3626_s23 = sshll.u32 %s3717_s2, 4  ;;  %s3627_s23 = int_to_ptr.vmem [resolvable:$false] %s3626_s23 }
 0x3ce   : > { %s3628_s15 = scalar_lea.vmem %s3627_s23, 64  ;;  %p3629_p3 = scmp.lt.s32.totalorder %s2557_s19, %s3627_s23 }
 0x3cf   : > { %v4147_v27 = vpack.c.bf16 %v1413_v23, %v1412_v21  ;;  %v1544_v28 = vpack.c.bf16 %v1539_v24, %v1538_v22  ;;  %v2214_v23 = vsel %vm2212_vm2, %v4185_v16, 0.0  ;;  %v2213_v24 = vsel %vm2212_vm2, %v4187_v17, 0.0  ;;  %p3630_p4 = scmp.lt.s32.totalorder %s3628_s15, %s3622_s14 }
 0x3d1   : > { %3056 = vmatprep.mubr.bf16.mxu0 %v4147_v27  ;;  %3076 = vmatprep.mubr.bf16.mxu1 %v1544_v28  ;;  %p3631_p8 = por %p3630_p4, %p3629_p3 }
 0x3d2   : > { %3057 = vmatmul.mubr.bf16.vlgmr.msra.gmra.mxu0 %v4149_v14  ;;  %3077 = vmatmul.mubr.bf16.vlgmr.msra.gmra.mxu1 %v1545_v29 }
 0x3d3   : > { %3081 = vmatpush3.bf16.xpose.msra.mxu0 %v1544_v28  ;;  %3087 = vmatpush3.bf16.xpose.msra.mxu1 %v1545_v29  ;;  %p3632_p6 = pnand %p3631_p8, %p3625_p1 }
 0x3d4   : > { %3088 = vmatprep.mubr.msk.bf16.mxu1 %vm3716_vm0, %v3715_v13  ;;  %3098 = vmatprep.subr.bf16.mxu1 %v3715_v13 }
 0x3d5   : > { %3082 = vmatprep.mubr.msk.bf16.mxu0 %vm3716_vm0, %v3715_v13  ;;  %3092 = vmatprep.subr.bf16.mxu0 %v3715_v13 }
 0x492   : > { %v3058_v30 = vpop.f32.mrf.mxu0  ;;  %v3078_v18 = vpop.f32.mrf.mxu1 }
 0x494   : > { %v1644_v31 = vpop.f32.mrf.mxu0  ;;  %v1759_v32 = vpop.f32.mrf.mxu1 }
 0x496   : > { %v3059_v33 = vpop.f32.mrf.mxu0  ;;  %v3079_v37 = vpop.f32.mrf.mxu1 }
 0x497   : > { %v1660_v34 = vpack.c.bf16 %v3059_v33, %v3058_v30  ;;  %v1775_v39 = vpack.c.bf16 %v3079_v37, %v3078_v18 }
 0x498   : > { %v1647_v35 = vpop.f32.mrf.mxu0  ;;  %v1762_v38 = vpop.f32.mrf.mxu1 }
 0x499   : > { %v1659_v36 = vpack.c.bf16 %v1647_v35, %v1644_v31  ;;  %3089 = vmatmul.mubr.bf16.vlgmr.msra.gmra.mxu1 %v1660_v34  ;;  %v1774_v40 = vpack.c.bf16 %v1762_v38, %v1759_v32  ;;  %v2215_v31 = vadd.f32 %v2214_v23, %v2213_v24 }
 0x49a   : > { %3099 = vmatpush3.bf16.xpose.msra.mxu1 %v4149_v14  ;;  %3100 = vmatprep.mubr.msk.bf16.mxu1 %vm3716_vm0, %v3715_v13 }
 0x49b   : > { %3083 = vmatmul.mubr.bf16.vlgmr.msra.gmra.mxu0 %v1659_v36  ;;  %3110 = vmatprep.subr.bf16.mxu1 %v3715_v13 }
 0x49c   : > { %3093 = vmatpush3.bf16.xpose.msra.mxu0 %v4147_v27  ;;  %3094 = vmatprep.mubr.msk.bf16.mxu0 %vm3716_vm0, %v3715_v13 }
 0x49d   : > { %3104 = vmatprep.subr.bf16.mxu0 %v3715_v13 }
 0x4a1   : > { %3101 = vmatmul.mubr.bf16.vlgmr.msra.gmra.mxu1 %v1775_v39 }
 0x4a2   : > { %3111 = vmatpush3.bf16.msra.mxu1 %v1545_v29  ;;  %3112 = vmatprep.mubr.msk.bf16.mxu1 %vm3716_vm0, %v3715_v13  ;;  %v2223_v29 = vsel %vm2212_vm2, %v4191_v1, 0.0 }
 0x4a3   : > { %3095 = vmatmul.mubr.bf16.vlgmr.msra.gmra.mxu0 %v1774_v40  ;;  %3122 = vmatprep.subr.bf16.mxu1 %v3715_v13  ;;  %v2216_v40 = vrot.slane %v2215_v31, 4 }
 0x4a4   : > { %3105 = vmatpush3.bf16.msra.mxu0 %v1544_v28  ;;  %3106 = vmatprep.mubr.msk.bf16.mxu0 %vm3716_vm0, %v3715_v13  ;;  %v2222_v28 = vsel %vm2212_vm2, %v4189_v20, 0.0 }
 0x4a5   : > { %3116 = vmatprep.subr.bf16.mxu0 %v3715_v13  ;;  %v2224_v34 = vadd.f32 %v2223_v29, %v2222_v28 }
 0x559   : > { %v1851_v41 = vpop.f32.mrf.mxu1 }
 0x55a   : > { %v1946_v42 = vsel %vm917_vm1, %v1851_v41, -inf }
 0x55b   : > { %1947 = vmax.xlane.f32.xlu0 %v1946_v42  ;;  %v1810_v43 = vpop.f32.mrf.mxu0  ;;  %v3090_v44 = vpop.f32.mrf.mxu1  ;;  %v2225_v42 = vrot.slane %v2224_v34, 4 }
 0x55c   : > { %v1940_v45 = vsel %vm917_vm1, %v1810_v43, -inf }
 0x55d   : > { %v1854_v46 = vpop.f32.mrf.mxu1  ;;  %1941 = vmax.xlane.f32.xlu1 %v1940_v45  ;;  %v3084_v47 = vpop.f32.mrf.mxu0  ;;  %v2217_v45 = vadd.f32 %v2216_v40, %v2215_v31  ;;  %v3347_v40 = vld [vmem:[#allocation13 + $0x20] sm:$0xff]  }
 0x55e   : > { %v1949_v50 = vsel %vm917_vm1, %v1854_v46, -inf  ;;  %v2226_v47 = vadd.f32 %v2225_v42, %v2224_v34  ;;  %v3349_v42 = vld [vmem:[#allocation13 + $0x18] sm:$0xff]  }
 0x55f   : > { %v1813_v48 = vpop.f32.mrf.mxu0  ;;  %v3091_v49 = vpop.f32.mrf.mxu1 }
 0x560   : > { %v1943_v55 = vsel %vm917_vm1, %v1813_v48, -inf  ;;  %v2218_v49 = vrot.slane %v2217_v45, 2 }
 0x561   : > { %v1933_v51 = vpop.f32.mrf.mxu1  ;;  %1950 = vmax.xlane.f32.xlu1 %v1949_v50  ;;  %v3085_v52 = vpop.f32.mrf.mxu0 }
 0x562   : > { %v1992_v61 = vsel %vm917_vm1, %v1933_v51, -inf  ;;  %v2227_v52 = vrot.slane %v2226_v47, 2 }
 0x563   : > { %v1892_v53 = vpop.f32.mrf.mxu0  ;;  %v3102_v54 = vpop.f32.mrf.mxu1 }
 0x564   : > { %v1986_v56 = vsel %vm917_vm1, %v1892_v53, -inf }
 0x565   : > { %v1936_v57 = vpop.f32.mrf.mxu1  ;;  %1944 = vmax.xlane.f32.xlu1 %v1943_v55  ;;  %1987 = vmax.xlane.f32.xlu0 %v1986_v56  ;;  %v3096_v58 = vpop.f32.mrf.mxu0  ;;  %v2219_v55 = vadd.f32 %v2218_v49, %v2217_v45  ;;  %v3352_v45 = vld [vmem:[#allocation14 + $0x18] sm:$0xff]   ;;  %v3356_v49 = vld [vmem:[#allocation14 + $0x8] sm:$0xff]  }
 0x566   : > { %v1995_v0 = vsel %vm917_vm1, %v1936_v57, -inf  ;;  %v2228_v58 = vadd.f32 %v2227_v52, %v2226_v47  ;;  %v3354_v47 = vld [vmem:[#allocation14 + $0x10] sm:$0xff]  }
 0x567   : > { %v1895_v59 = vpop.f32.mrf.mxu0  ;;  %v3103_v60 = vpop.f32.mrf.mxu1 }
 0x568   : > { %v1989_v62 = vsel %vm917_vm1, %v1895_v59, -inf }
 0x569   : > { %1993 = vmax.xlane.f32.xlu0 %v1992_v61  ;;  %1990 = vmax.xlane.f32.xlu1 %v1989_v62  ;;  %v3097_v63 = vpop.f32.mrf.mxu0  ;;  %v2220_v61 = vrot.slane %v2219_v55, 1 }
 0x56a   : > { %v2229_v63 = vrot.slane %v2228_v58, 1 }
 0x56d   : > { %1996 = vmax.xlane.f32.xlu1 %v1995_v0  ;;  %v2221_v0 = vadd.f32 %v2220_v61, %v2219_v55 }
 0x5e4   : > { %v1948_v4 = vpop.xlane.xlu0 %1947 }
 0x5e5   : > { %v1954_v5 = vsub.f32 %v1851_v41, %v1948_v4  ;;  %v2230_v4 = vadd.f32 %v2229_v63, %v2228_v58 }
 0x5e6   : > { %v1942_v2 = vpop.xlane.xlu1 %1941 }
 0x5e7   : > { %v1960_v6 = vmul.f32 1.442695, %v1954_v5  ;;  %v1952_v7 = vsub.f32 %v1810_v43, %v1942_v2  ;;  %v2231_v5 = vmax.f32 %v2221_v0, 1.0  ;;  %v2232_v2 = vmax.f32 %v2230_v4, 1.0 }
 0x5e9   : > { %3376 = vpow2.f32 %v1960_v6  ;;  %v1956_v8 = vmul.f32 1.442695, %v1952_v7 }
 0x5ea   : > { %v1951_v9 = vpop.xlane.xlu1 %1950 }
 0x5eb   : > { %3378 = vpow2.f32 %v1956_v8  ;;  %v1955_v10 = vsub.f32 %v1854_v46, %v1951_v9 }
 0x5ed   : > { %v1962_v11 = vmul.f32 1.442695, %v1955_v10 }
 0x5ee   : > { %v1945_v12 = vpop.xlane.xlu1 %1944  ;;  %v1988_v15 = vpop.xlane.xlu0 %1987 }
 0x5ef   : > { %3380 = vpow2.f32 %v1962_v11  ;;  %v1953_v3 = vsub.f32 %v1813_v48, %v1945_v12  ;;  %v1998_v19 = vsub.f32 %v1892_v53, %v1988_v15 }
 0x5f1   : > { %v1958_v21 = vmul.f32 1.442695, %v1953_v3  ;;  %v2002_v22 = vmul.f32 1.442695, %v1998_v19 }
 0x5f2   : > { %v1994_v25 = vpop.xlane.xlu0 %1993  ;;  %v1991_v26 = vpop.xlane.xlu1 %1990 }
 0x5f3   : > { %3382 = vpow2.f32 %v1958_v21  ;;  %v2000_v30 = vsub.f32 %v1933_v51, %v1994_v25  ;;  %v1999_v18 = vsub.f32 %v1895_v59, %v1991_v26 }
 0x5f4   : > { %3384 = vpow2.f32 %v2002_v22 }
 0x5f5   : > { %v2006_v32 = vmul.f32 1.442695, %v2000_v30  ;;  %v2004_v33 = vmul.f32 1.442695, %v1999_v18 }
 0x5f6   : > { %v4197_v35 = vpop.eup %3376  ;;  %v1997_v36 = vpop.xlane.xlu1 %1996 }
 0x5f7   : > { %3386 = vpow2.f32 %v2006_v32  ;;  %v2001_v37 = vsub.f32 %v1936_v57, %v1997_v36  ;;  %v1970_v38 = vsel %vm917_vm1, %v4197_v35, 0.0  ;;  %v3343_v36 = vld [vmem:[#allocation13 + $0x30] sm:$0xff]  }
 0x5f8   : > { %v4201_v39 = vpop.eup %3378  ;;  %3388 = vpow2.f32 %v2004_v33  ;;  %1971 = vadd.xlane.f32.xlu0 %v1970_v38  ;;  %v3345_v38 = vld [vmem:[#allocation13 + $0x28] sm:$0xff]  }
 0x5f9   : > { %v2008_v41 = vmul.f32 1.442695, %v2001_v37  ;;  %v1964_v43 = vsel %vm917_vm1, %v4201_v39, 0.0  ;;  %v3344_v37 = vld [vmem:[#allocation14 + $0x38] sm:$0xff]  }
 0x5fb   : > { %3390 = vpow2.f32 %v2008_v41  ;;  %v3348_v41 = vld [vmem:[#allocation14 + $0x28] sm:$0xff]  }
 0x5fc   : > { %v3381_v44 = vpop.eup %3380  ;;  %1965 = vadd.xlane.f32.xlu0 %v1964_v43  ;;  %3392 = vrcp.f32 %v2231_v5  ;;  %v3350_v43 = vld [vmem:[#allocation14 + $0x20] sm:$0xff]  }
 0x5fd   : > { %v1973_v46 = vsel %vm917_vm1, %v3381_v44, 0.0  ;;  %3394 = vrcp.f32 %v2232_v2 }
 0x5fe   : > { %1974 = vadd.xlane.f32.xlu1 %v1973_v46  ;;  %v3353_v46 = vld [vmem:[#allocation13 + $0x8] sm:$0xff]  }
 0x600   : > { %v3383_v48 = vpop.eup %3382 }
 0x601   : > { %v4206_v50 = vpop.eup %3384  ;;  %v1967_v51 = vsel %vm917_vm1, %v3383_v48, 0.0 }
 0x602   : > { %v2010_v53 = vsel %vm917_vm1, %v4206_v50, 0.0  ;;  %1968 = vadd.xlane.f32.xlu1 %v1967_v51 }
 0x603   : > { %2011 = vadd.xlane.f32.xlu0 %v2010_v53 }
 0x604   : > { %v4211_v54 = vpop.eup %3386 }
 0x605   : > { %v3389_v56 = vpop.eup %3388  ;;  %v2016_v57 = vsel %vm917_vm1, %v4211_v54, 0.0 }
 0x606   : > { %v2013_v59 = vsel %vm917_vm1, %v3389_v56, 0.0 }
 0x607   : > { %2017 = vadd.xlane.f32.xlu0 %v2016_v57  ;;  %2014 = vadd.xlane.f32.xlu1 %v2013_v59 }
 0x608   : > { %v3391_v60 = vpop.eup %3390 }
 0x609   : > { %v2019_v62 = vsel %vm917_vm1, %v3391_v60, 0.0  ;;  %v3393_v6 = vpop.eup %3392 }
 0x60a   : > { %v3395_v7 = vpop.eup %3394 }
 0x60b   : > { %2020 = vadd.xlane.f32.xlu1 %v2019_v62 }
 0x61c   : > { %2242 = vperm.xlu1 %3291, %v4185_v16  }
 0x61d   : > { %2237 = vperm.xlu0 %3290, %v4187_v17  }
 0x620   : > { %2247 = vperm.xlu1 %3291, %v4189_v20  }
 0x621   : > { %2252 = vperm.xlu0 %3290, %v4191_v1  }
 0x624   : > { %2275 = vperm.xlu1 %3291, %v3393_v6  }
 0x625   : > { %2280 = vperm.xlu0 %3290, %v3395_v7  }
 0x681   : > { %v1972_v8 = vpop.xlane.xlu0 %1971 }
 0x682   : > { %3396 = vrcp.f32 %v1972_v8 }
 0x685   : > { %v1966_v9 = vpop.xlane.xlu0 %1965 }
 0x687   : > { %v1975_v10 = vpop.xlane.xlu1 %1974 }
 0x688   : > { %3398 = vrcp.f32 %v1975_v10 }
 0x689   : > { %3400 = vrcp.f32 %v1966_v9 }
 0x68b   : > { %v1969_v11 = vpop.xlane.xlu1 %1968 }
 0x68c   : > { %v2012_v12 = vpop.xlane.xlu0 %2011  ;;  %3402 = vrcp.f32 %v1969_v11 }
 0x68d   : > { %3404 = vrcp.f32 %v2012_v12 }
 0x68f   : > { %v3397_v17 = vpop.eup %3396 }
 0x690   : > { %v2018_v15 = vpop.xlane.xlu0 %2017  ;;  %v2015_v16 = vpop.xlane.xlu1 %2014  ;;  %v1982_v20 = vmul.f32 %v3397_v17, %v4197_v35 }
 0x691   : > { %3406 = vrcp.f32 %v2015_v16 }
 0x692   : > { %3408 = vrcp.f32 %v2018_v15 }
 0x694   : > { %v2021_v3 = vpop.xlane.xlu1 %2020 }
 0x695   : > { %v3399_v19 = vpop.eup %3398  ;;  %3410 = vrcp.f32 %v2021_v3 }
 0x696   : > { %v1983_v1 = vmul.f32 %v3399_v19, %v3381_v44  ;;  %v3401_v21 = vpop.eup %3400  ;;  %v3351_v44 = vld [vmem:[#allocation13 + $0x10] sm:$0xff]  }
 0x697   : > { %v1980_v24 = vmul.f32 %v3401_v21, %v4201_v39  ;;  %v3346_v39 = vld [vmem:[#allocation14 + $0x30] sm:$0xff]  }
 0x698   : > { %v1985_v22 = vpack.c.bf16 %v1983_v1, %v1982_v20  ;;  %v2238_v51 = vpop.permute.xlu0 %2237  ;;  %v2243_v52 = vpop.permute.xlu1 %2242 }
 0x699   : > { %v3403_v23 = vpop.eup %3402 }
 0x69a   : > { %3113 = vmatmul.mubr.msk.bf16.vlgmr.msra.gmra.mxu1 %vm917_vm1, %v1985_v22  ;;  %v1981_v25 = vmul.f32 %v3403_v23, %v3383_v48  ;;  %v3405_v28 = vpop.eup %3404  ;;  %v3355_v48 = vld [vmem:[#allocation13] sm:$0xff]  }
 0x69b   : > { %3123 = vmatpush3.bf16.msra.mxu1 %v4149_v14  ;;  %3124 = vmatprep.mubr.msk.bf16.mxu1 %vm3716_vm0, %v3715_v13  ;;  %v2026_v31 = vmul.f32 %v3405_v28, %v4206_v50  ;;  %v3357_v50 = vld [vmem:[#allocation14] sm:$0xff]  }
 0x69c   : > { %v1984_v26 = vpack.c.bf16 %v1981_v25, %v1980_v24  ;;  %3148 = vmatprep.subr.bf16.mxu1 %v3715_v13  ;;  %v2253_v55 = vpop.permute.xlu0 %2252 }
 0x69e   : > { %3107 = vmatmul.mubr.msk.bf16.vlgmr.msra.gmra.mxu0 %vm917_vm1, %v1984_v26  ;;  %v3407_v29 = vpop.eup %3406 }
 0x69f   : > { %3117 = vmatpush3.bf16.msra.mxu0 %v4147_v27  ;;  %3118 = vmatprep.mubr.msk.bf16.mxu0 %vm3716_vm0, %v3715_v13  ;;  %v3409_v30 = vpop.eup %3408  ;;  %v2027_v18 = vmul.f32 %v3407_v29, %v3389_v56  ;;  %v3342_v27 = vld [vmem:[#allocation13 + $0x38] sm:$0xff]   ;;  %v2248_v56 = vpop.permute.xlu1 %2247 }
 0x6a0   : > { %3128 = vmatprep.subr.bf16.mxu0 %v3715_v13  ;;  %v2028_v32 = vmul.f32 %v3409_v30, %v4211_v54 }
 0x6a1   : > { %v2030_v34 = vpack.c.bf16 %v2027_v18, %v2026_v31  ;;  %v2281_v18 = vpop.permute.xlu0 %2280 }
 0x6a2   : > { %v3411_v14 = vpop.eup %3410 }
 0x6a3   : > { %v2029_v33 = vmul.f32 %v3411_v14, %v3391_v60 }
 0x6a5   : > { %v2031_v35 = vpack.c.bf16 %v2029_v33, %v2028_v32 }
 0x6a6   : > { %3119 = vmatmul.mubr.msk.bf16.vlgmr.msra.gmra.mxu0 %vm917_vm1, %v2030_v34 }
 0x6a7   : > { %3125 = vmatmul.mubr.msk.bf16.vlgmr.msra.gmra.mxu1 %vm917_vm1, %v2031_v35  ;;  %3144 = vmatprep.mubr.msk.bf16.mxu0 %vm3716_vm0, %v3715_v13 }
 0x6a8   : > { %3164 = vmatprep.mubr.msk.bf16.mxu1 %vm3716_vm0, %v3715_v13  ;;  %3149 = vmatpush3.bf16.msra.mxu1 %v3342_v27 }
 0x6a9   : > { %3150 = vmatprep.subr.bf16.mxu1 %v3715_v13  ;;  %3129 = vmatpush3.bf16.msra.mxu0 %v3344_v37 }
 0x6aa   : > { %3130 = vmatprep.subr.bf16.mxu0 %v3715_v13 }
 0x6ac   : > { %3151 = vmatpush3.bf16.msra.mxu1 %v3343_v36  ;;  %v2276_v36 = vpop.permute.xlu1 %2275 }
 0x6ad   : > { %3152 = vmatprep.subr.bf16.mxu1 %v3715_v13  ;;  %3131 = vmatpush3.bf16.msra.mxu0 %v3346_v39 }
 0x6ae   : > { %3132 = vmatprep.subr.bf16.mxu0 %v3715_v13 }
 0x6b0   : > { %3153 = vmatpush3.bf16.msra.mxu1 %v3345_v38 }
 0x6b1   : > { %3154 = vmatprep.subr.bf16.mxu1 %v3715_v13  ;;  %3133 = vmatpush3.bf16.msra.mxu0 %v3348_v41 }
 0x6b2   : > { %3134 = vmatprep.subr.bf16.mxu0 %v3715_v13 }
 0x6b4   : > { %3155 = vmatpush3.bf16.msra.mxu1 %v3347_v40 }
 0x6b5   : > { %3156 = vmatprep.subr.bf16.mxu1 %v3715_v13  ;;  %3135 = vmatpush3.bf16.msra.mxu0 %v3350_v43 }
 0x6b6   : > { %3136 = vmatprep.subr.bf16.mxu0 %v3715_v13 }
 0x6b8   : > { %3157 = vmatpush3.bf16.msra.mxu1 %v3349_v42 }
 0x6b9   : > { %3158 = vmatprep.subr.bf16.mxu1 %v3715_v13  ;;  %3137 = vmatpush3.bf16.msra.mxu0 %v3352_v45 }
 0x6ba   : > { %3138 = vmatprep.subr.bf16.mxu0 %v3715_v13 }
 0x6bc   : > { %3159 = vmatpush3.bf16.msra.mxu1 %v3351_v44 }
 0x6bd   : > { %3160 = vmatprep.subr.bf16.mxu1 %v3715_v13  ;;  %3139 = vmatpush3.bf16.msra.mxu0 %v3354_v47 }
 0x6be   : > { %3140 = vmatprep.subr.bf16.mxu0 %v3715_v13 }
 0x6c0   : > { %3161 = vmatpush3.bf16.msra.mxu1 %v3353_v46 }
 0x6c1   : > { %3162 = vmatprep.subr.bf16.mxu1 %v3715_v13  ;;  %3141 = vmatpush3.bf16.msra.mxu0 %v3356_v49 }
 0x6c2   : > { %3142 = vmatprep.subr.bf16.mxu0 %v3715_v13 }
 0x6c4   : > { %3163 = vmatpush3.bf16.msra.mxu1 %v3355_v48 }
 0x6c5   : > { %3143 = vmatpush3.bf16.msra.mxu0 %v3357_v50 }
 0x75a   : > { %v2113_v53 = vpop.f32.mrf.mxu1 }
 0x75b   : > { %v2257_v59 = vmul.f32 %v2248_v56, %v2113_v53 }
 0x75c   : > { %v3114_v54 = vpop.f32.mrf.mxu1 }
 0x75e   : > { %v2069_v57 = vpop.f32.mrf.mxu0  ;;  %v2116_v58 = vpop.f32.mrf.mxu1 }
 0x75f   : > { %v2258_v60 = vmul.f32 %v2253_v55, %v2116_v58  ;;  %v2255_v4 = vmul.f32 %v2238_v51, %v2069_v57 }
 0x760   : > { %v3108_v61 = vpop.f32.mrf.mxu0  ;;  %v3115_v62 = vpop.f32.mrf.mxu1 }
 0x761   : > { %v2266_v63 = vadd.f32 %v2258_v60, %v2257_v59 }
 0x762   : > { %v2072_v0 = vpop.f32.mrf.mxu0 }
 0x763   : > { %v2267_v5 = vrot.slane %v2266_v63, 4  ;;  %v2256_v2 = vmul.f32 %v2243_v52, %v2072_v0 }
 0x764   : > { %v3109_v13 = vpop.f32.mrf.mxu0 }
 0x765   : > { %v2268_v6 = vadd.f32 %v2267_v5, %v2266_v63  ;;  %v2259_v7 = vadd.f32 %v2256_v2, %v2255_v4  ;;  %v2840_v5 = vld [vmem:[%s4374_s3] ss:$0 sm:$0xff] }
 0x766   : > { %v2157_v8 = vpop.f32.mrf.mxu0 }
 0x767   : > { %v2269_v9 = vrot.slane %v2268_v6, 2  ;;  %v2260_v10 = vrot.slane %v2259_v7, 4  ;;  %v2201_v11 = vpop.f32.mrf.mxu1  ;;  %v2285_v1 = vmul.f32 %v2238_v51, %v2157_v8 }
 0x768   : > { %v3120_v12 = vpop.f32.mrf.mxu0  ;;  %v2287_v23 = vmul.f32 %v2248_v56, %v2201_v11 }
 0x769   : > { %v2270_v15 = vadd.f32 %v2269_v9, %v2268_v6  ;;  %v2261_v16 = vadd.f32 %v2260_v10, %v2259_v7  ;;  %v3126_v17 = vpop.f32.mrf.mxu1 }
 0x76a   : > { %v2160_v3 = vpop.f32.mrf.mxu0 }
 0x76b   : > { %v2271_v19 = vrot.slane %v2270_v15, 1  ;;  %v2262_v20 = vrot.slane %v2261_v16, 2  ;;  %v2286_v21 = vmul.f32 %v2243_v52, %v2160_v3  ;;  %v2204_v22 = vpop.f32.mrf.mxu1 }
 0x76c   : > { %v2288_v24 = vmul.f32 %v2253_v55, %v2204_v22  ;;  %v3121_v25 = vpop.f32.mrf.mxu0 }
 0x76d   : > { %v2272_v26 = vadd.f32 %v2271_v19, %v2270_v15  ;;  %v2263_v28 = vadd.f32 %v2262_v20, %v2261_v16  ;;  %v2289_v29 = vadd.f32 %v2286_v21, %v2285_v1  ;;  %v3127_v30 = vpop.f32.mrf.mxu1 }
 0x76e   : > { %v2296_v14 = vadd.f32 %v2288_v24, %v2287_v23 }
 0x76f   : > { %v2284_v31 = vmul.f32 %v2281_v18, %v2272_v26  ;;  %v2264_v32 = vrot.slane %v2263_v28, 1  ;;  %v2290_v33 = vrot.slane %v2289_v29, 4 }
 0x770   : > { %v2297_v34 = vrot.slane %v2296_v14, 4 }
 0x771   : > { %v2265_v35 = vadd.f32 %v2264_v32, %v2263_v28  ;;  %v2291_v27 = vadd.f32 %v2290_v33, %v2289_v29  ;;  %v2306_v38 = vpack.c.bf16 %v2284_v31, %v2284_v31 }
 0x772   : > { %v2298_v37 = vadd.f32 %v2297_v34, %v2296_v14 }
 0x773   : > { %v2283_v39 = vmul.f32 %v2276_v36, %v2265_v35  ;;  %v2292_v40 = vrot.slane %v2291_v27, 2  ;;  %v2440_v45 = vunpack.c.l.b16 %v2306_v38 }
 0x774   : > { %v2299_v41 = vrot.slane %v2298_v37, 2 }
 0x775   : > { %v2305_v42 = vpack.c.bf16 %v2283_v39, %v2283_v39  ;;  %v2293_v43 = vadd.f32 %v2292_v40, %v2291_v27 }
 0x776   : > { %v2300_v44 = vadd.f32 %v2299_v41, %v2298_v37 }
 0x777   : > { %v2439_v46 = vunpack.c.l.b16 %v2305_v42  ;;  %v2294_v47 = vrot.slane %v2293_v43, 1 }
 0x778   : > { %v2301_v48 = vrot.slane %v2300_v44, 1 }
 0x779   : > { %v2295_v49 = vadd.f32 %v2294_v47, %v2293_v43  ;;  %v2441_v50 = vsel %vm2345_vm3, %v2440_v45, %v2439_v46 }
 0x77a   : > { %v2302_v51 = vadd.f32 %v2301_v48, %v2300_v44  ;;  %v2442_v52 = vpack.c.b16 %v2441_v50, %v2441_v50 }
 0x77b   : > { %v2303_v53 = vmul.f32 %v2295_v49, %v2276_v36 }
 0x77c   : > { %v2304_v54 = vmul.f32 %v2302_v51, %v2281_v18  ;;  %3165 = vmatmul.mubr.bf16.vlgmr.msra.gmra.mxu1 %v2442_v52 }
 0x77d   : > { %v2323_v55 = vpack.c.bf16 %v2303_v53, %v2303_v53 }
 0x77e   : > { %v2324_v56 = vpack.c.bf16 %v2304_v54, %v2304_v54 }
 0x77f   : > { %v2343_v57 = vunpack.c.l.b16 %v2323_v55 }
 0x780   : > { %v2344_v58 = vunpack.c.l.b16 %v2324_v56 }
 0x782   : > { %v2346_v59 = vsel %vm2345_vm3, %v2344_v58, %v2343_v57 }
 0x783   : > { %v2347_v60 = vpack.c.b16 %v2346_v59, %v2346_v59 }
 0x785   : > { %3145 = vmatmul.mubr.bf16.vlgmr.msra.gmra.mxu0 %v2347_v60 }
 0x83c   : > { %v2526_v61 = vpop.f32.mrf.mxu1 }
 0x83e   : > { %v3166_v62 = vpop.f32.mrf.mxu1 }
 0x840   : > { %v2529_v63 = vpop.f32.mrf.mxu1 }
 0x842   : > { %v3167_v0 = vpop.f32.mrf.mxu1 }
 0x845   : > { %v2431_v4 = vpop.f32.mrf.mxu0 }
 0x846   : > { %v2527_v2 = vadd.f32 %v2526_v61, %v2431_v4 }
 0x847   : > { %v3146_v13 = vpop.f32.mrf.mxu0 }
 0x848   : > { %v2539_v6 = vadd.f32 %v2840_v5, %v2527_v2 }
 0x849   : > { %v2434_v7 = vpop.f32.mrf.mxu0 }
 0x84a   : > { %v2540_v8 = vmax.f32 %v2539_v6, 0.0 }
 0x84b   : > { %v3147_v9 = vpop.f32.mrf.mxu0 }
 0x84c   : > { %2541 = vst [vmem:[%s777_s26] sm:$0x3] %v2540_v8 }
 0x84d   : > { %3635 = shalt.err (!%p3632_p6)
}
 0x84e   : > { %s3636_s24 = scalar_lea.hbm %s4265_s10, 32  ;;  %s3640_s3 = scalar_lea.hbm %s4375_s27, 64 }
 0x84f   : > { %p3637_p11 = scmp.ne.s32.totalorder %s4265_s10, %s3636_s24  ;;  %p3641_p2 = scmp.lt.s32.totalorder %s4265_s10, %s4375_s27 }
 0x850   : > { %p3642_p5 = scmp.lt.s32.totalorder %s3640_s3, %s3636_s24 }
 0x851   : > { %p3638_p7 = pnand %p3637_p11, %p4376_p12 }
 0x852   : > { %p3643_p10 = por %p3642_p5, %p3641_p2 }
 0x853   : > { %p3639_p0 = pneg %p3638_p7 }
 0x855   : > { %p3644_p9 = pnand %p3643_p10, %p3639_p0 }
 0x857   : > { %3647 = shalt.err (!%p3644_p9)
}
 0x858   : > { %3198 = dma.vmem_to_hbm [thread:$0]  (%p4376_p12), %s2557_s19, 32, %s4265_s10, %s2543_s12  }
 0x859 PF: > { %s2568_s16 = sand.u32 1, %s3690_s0   ;;  %p4377_p13 = scmp.ne.s32.totalorder %s4356_s25, 0 }
 0x85a   : > { %p4378_p1 = scmp.ge.s32.totalorder %s3702_s21, 2  ;;  %s2569_s29 = scalar_lea.sflag [#allocation4], %s2568_s16 }
 0x85c   : > { %p3227_p3 = pnand %p4378_p1, %p4377_p13 }
 0x85e   : > { %p3228_p4 = pneg %p3227_p3 }
 0x860   : > { %3685 = dma.done.wait (%p3228_p4), %s2569_s29, 32  }
 0x861   : > { %3687 = vsyncadd (%p3228_p4), %s2569_s29, 4294967264  ;;  %s4379_s14 = sld [smem:[#allocation23_spill]]  ;;  %p36_p8 = scmp.ge.s32.totalorder %s3949_s28, 4  }
 0x862   : > { %s4380_s0 = smov %s3694_s30  ;;  %s4381_s30 = smov %s3698_s20 }
 0x863   : > { %s4383_s21 = smov %s3949_s28  ;;  %38 = sbr.rel (!%p36_p8) target bundleno = 23 (0x17), region = 178 }
 0x867   : > { %s4382_s20 = smov %s4379_s14 }
 0x868   :  { %2574 = vsyncpa [#allocation3], 1 }
 0x869   :  { %2576 = vsyncpa [#allocation3 + $0x1], 1 }
 0x86a   :  { %2577 = vsyncpa [#allocation6], 1 }
 0x86b   :  { %2578 = vsyncpa [#allocation9], 1 }
 0x86c   :  { %2579 = vsyncpa [#allocation12], 1 }
 0x86d   :  { %2580 = vsyncpa [#allocation15], 1 }
 0x86e   :  { %2581 = vsyncpa [#allocation4], 1 }
 0x86f   :  { %2583 = vsyncpa [#allocation4 + $0x1], 1 }

</bundles_post_ra>
